<compile_context>
chip_gen: v5e
topology: v5e:2x2
jax: 0.10.0
libtpu: 0.0.40
codegen_flags: <defaults>
</compile_context>

<pallas_src>
import math
import jax
import jax.numpy as jnp
from jax.experimental import pallas as pl
from jax.experimental.pallas import tpu as pltpu

# ----------------------------- model config --------------------------------
BATCH = 2
SEQ = 8
BS = BATCH * SEQ          # flattened rows (batch * seq)
VOCAB = 25
HIDDEN = 32
NUM_LAYERS = 2
NUM_HEADS = 4
HEAD_DIM = HIDDEN // NUM_HEADS
INTERMEDIATE = 64
MAX_POS = 40
TYPE_VOCAB = 2
LN_EPS = 1e-12
NEG_INF = -1e30

# packed per-layer [1, HIDDEN] vector rows
_BO, _B2, _LN1G, _LN1B, _LN2G, _LN2B = range(6)
NUM_VEC_ROWS = 6


# ----------------------------- in-kernel helpers ---------------------------
def _layernorm(x, gamma, beta):
    mu = jnp.mean(x, axis=-1, keepdims=True)
    var = jnp.mean((x - mu) * (x - mu), axis=-1, keepdims=True)
    return (x - mu) * jax.lax.rsqrt(var + LN_EPS) * gamma + beta


def _gelu(x):
    # TODO(synk): RNABERT uses the exact erf-based GELU; the tanh approximation
    # is kept to stay on the guaranteed EUP tanh lowering path (~1e-3 drift).
    c = 0.7978845608028654  # sqrt(2/pi)
    return 0.5 * x * (1.0 + jnp.tanh(c * (x + 0.044715 * x * x * x)))


# ----------------------------- the fused kernel ----------------------------
def fused_encoder_kernel(word_ref, pt_ref, mask_ref, emb_ln_ref,
                         wqkv_ref, bqkv_ref, wo_ref, w1_ref, b1_ref, w2_ref,
                         vec_ref, out_ref):
    # Block-diagonal additive mask over flattened (batch*seq) rows:
    # rows may only attend to keys of the same batch element.
    attn_mask = mask_ref[...]                       # [BS, BS]

    # --- embeddings: add + layernorm (fused) ---
    emb_ln = emb_ln_ref[...]                        # [2, H]
    x = word_ref[...] + pt_ref[...]                 # [BS, H]
    x = _layernorm(x, emb_ln[0:1, :], emb_ln[1:2, :])

    scale = 1.0 / math.sqrt(HEAD_DIM)

    for l in range(NUM_LAYERS):                     # static unroll
        wqkv = wqkv_ref[l]                          # [H, 3H]
        bqkv = bqkv_ref[l]                          # [1, 3H]
        wo = wo_ref[l]                              # [H, H]
        w1 = w1_ref[l]                              # [H, I]
        b1 = b1_ref[l]                              # [1, I]
        w2 = w2_ref[l]                              # [I, H]
        vec = vec_ref[l]                            # [6, H]
        bo = vec[_BO:_BO + 1, :]
        b2 = vec[_B2:_B2 + 1, :]
        ln1_g = vec[_LN1G:_LN1G + 1, :]
        ln1_b = vec[_LN1B:_LN1B + 1, :]
        ln2_g = vec[_LN2G:_LN2G + 1, :]
        ln2_b = vec[_LN2B:_LN2B + 1, :]

        # --- multi-head self-attention (fused QKV, 2-D matmuls) ---
        qkv = jnp.dot(x, wqkv, preferred_element_type=jnp.float32) + bqkv  # [BS,3H]

        ctx_heads = []
        for h in range(NUM_HEADS):                  # small static unroll
            lo = h * HEAD_DIM
            qh = qkv[:, lo:lo + HEAD_DIM]                               # [BS, hd]
            kh = qkv[:, HIDDEN + lo:HIDDEN + lo + HEAD_DIM]             # [BS, hd]
            vh = qkv[:, 2 * HIDDEN + lo:2 * HIDDEN + lo + HEAD_DIM]     # [BS, hd]
            s = jnp.einsum("qd,kd->qk", qh, kh,
                           preferred_element_type=jnp.float32)          # [BS, BS]
            s = s * scale + attn_mask
            s = s - jnp.max(s, axis=-1, keepdims=True)
            p = jnp.exp(s)
            p = p * pl.reciprocal(jnp.sum(p, axis=-1, keepdims=True),
                                  approx=True)
            ctx_heads.append(jnp.dot(p, vh,
                                     preferred_element_type=jnp.float32))
        ctx = jnp.concatenate(ctx_heads, axis=-1)                        # [BS, H]

        attn = jnp.dot(ctx, wo, preferred_element_type=jnp.float32) + bo
        h1 = _layernorm(attn + x, ln1_g, ln1_b)

        # --- feed-forward ---
        ff = jnp.dot(h1, w1, preferred_element_type=jnp.float32) + b1
        ff = _gelu(ff)
        ff = jnp.dot(ff, w2, preferred_element_type=jnp.float32) + b2
        x = _layernorm(ff + h1, ln2_g, ln2_b)

    out_ref[...] = x


# ----------------------------- wrapper --------------------------------------
_VMEM = pl.BlockSpec(memory_space=pltpu.MemorySpace.VMEM)


def fused_encoder(word_flat, pos_type_flat, attn_mask, packed):
    args = (word_flat, pos_type_flat, attn_mask, packed["emb_ln"],
            packed["wqkv"], packed["bqkv"], packed["wo"], packed["w1"],
            packed["b1"], packed["w2"], packed["vec"])
    return pl.pallas_call(
        fused_encoder_kernel,
        out_shape=jax.ShapeDtypeStruct((BS, HIDDEN), jnp.float32),
        in_specs=[_VMEM] * len(args),
        out_specs=_VMEM,
    )(*args)


def rnabert_for_ssp_forward(params, packed, input_ids):
    """Last encoder layer's hidden states (detached), shape [B, S, H]."""
    b, s = input_ids.shape
    # Embedding gathers stay in plain JAX (glue).
    word = jnp.take(params["word_emb"], input_ids.reshape(-1), axis=0)   # [B*S,H]
    pos = jnp.take(params["pos_emb"],
                   jnp.arange(s, dtype=jnp.int32), axis=0)               # [S,H]
    pos_type = pos + params["type_emb"][0][None, :]                      # [S,H]
    pos_type = jnp.tile(pos_type, (b, 1))                                # [B*S,H]
    # Block-diagonal mask so flattened rows only attend within their batch.
    batch_id = jnp.repeat(jnp.arange(b, dtype=jnp.int32), s)             # [B*S]
    attn_mask = jnp.where(batch_id[:, None] == batch_id[None, :],
                          0.0, NEG_INF).astype(jnp.float32)              # [B*S,B*S]

    hidden = fused_encoder(word, pos_type, attn_mask, packed)            # [B*S,H]
    return jax.lax.stop_gradient(hidden.reshape(b, s, HIDDEN))


# ----------------------------- parameter packing ----------------------------
def pack_params(params):
    """Fuse QKV and stack/pack per-layer params into a few VMEM-friendly arrays."""
    layers = params["layers"]
    wqkv = jnp.stack([jnp.concatenate([lp["wq"], lp["wk"], lp["wv"]], axis=1)
                      for lp in layers])                                 # [L,H,3H]
    bqkv = jnp.stack([jnp.concatenate([lp["bq"], lp["bk"], lp["bv"]], axis=1)
                      for lp in layers])                                 # [L,1,3H]
    wo = jnp.stack([lp["wo"] for lp in layers])                          # [L,H,H]
    w1 = jnp.stack([lp["w1"] for lp in layers])                          # [L,H,I]
    b1 = jnp.stack([lp["b1"] for lp in layers])                          # [L,1,I]
    w2 = jnp.stack([lp["w2"] for lp in layers])                          # [L,I,H]
    vec = jnp.stack([jnp.concatenate(
        [lp["bo"], lp["b2"], lp["ln1_g"], lp["ln1_b"], lp["ln2_g"], lp["ln2_b"]],
        axis=0) for lp in layers])                                       # [L,6,H]
    emb_ln = jnp.concatenate([params["emb_ln_g"], params["emb_ln_b"]], axis=0)
    return {"emb_ln": emb_ln, "wqkv": wqkv, "bqkv": bqkv, "wo": wo,
            "w1": w1, "b1": b1, "w2": w2, "vec": vec}


# ----------------------------- parameter init -------------------------------
def init_params(key):
    def dense(k, shape, scale=0.02):
        return jax.random.normal(k, shape, dtype=jnp.float32) * scale

    keys = jax.random.split(key, 4 + NUM_LAYERS)
    params = {
        "word_emb": dense(keys[0], (VOCAB, HIDDEN)),
        "pos_emb": dense(keys[1], (MAX_POS, HIDDEN)),
        "type_emb": dense(keys[2], (TYPE_VOCAB, HIDDEN)),
        "emb_ln_g": jnp.ones((1, HIDDEN), jnp.float32),
        "emb_ln_b": jnp.zeros((1, HIDDEN), jnp.float32),
        "layers": [],
    }
    for li in range(NUM_LAYERS):
        lk = jax.random.split(keys[4 + li], 6)
        lp = {
            "wq": dense(lk[0], (HIDDEN, HIDDEN)),
            "bq": jnp.zeros((1, HIDDEN), jnp.float32),
            "wk": dense(lk[1], (HIDDEN, HIDDEN)),
            "bk": jnp.zeros((1, HIDDEN), jnp.float32),
            "wv": dense(lk[2], (HIDDEN, HIDDEN)),
            "bv": jnp.zeros((1, HIDDEN), jnp.float32),
            "wo": dense(lk[3], (HIDDEN, HIDDEN)),
            "bo": jnp.zeros((1, HIDDEN), jnp.float32),
            "ln1_g": jnp.ones((1, HIDDEN), jnp.float32),
            "ln1_b": jnp.zeros((1, HIDDEN), jnp.float32),
            "w1": dense(lk[4], (HIDDEN, INTERMEDIATE)),
            "b1": jnp.zeros((1, INTERMEDIATE), jnp.float32),
            "w2": dense(lk[5], (INTERMEDIATE, HIDDEN)),
            "b2": jnp.zeros((1, HIDDEN), jnp.float32),
            "ln2_g": jnp.ones((1, HIDDEN), jnp.float32),
            "ln2_b": jnp.zeros((1, HIDDEN), jnp.float32),
        }
        params["layers"].append(lp)
    return params


# ----------------------------- main -----------------------------------------
if __name__ == "__main__":
    key = jax.random.PRNGKey(0)
    pkey, ikey = jax.random.split(key)
    params = init_params(pkey)
    packed = pack_params(params)   # one-time packing (plain JAX, outside kernel)
    input_ids = jax.random.randint(ikey, (BATCH, SEQ), 0, VOCAB, dtype=jnp.int32)

    fwd = jax.jit(rnabert_for_ssp_forward)
    embeddings = fwd(params, packed, input_ids)
    embeddings = jax.block_until_ready(embeddings)

    assert embeddings.shape == (BATCH, SEQ, HIDDEN)
    assert embeddings.dtype == jnp.float32
    assert bool(jnp.all(jnp.isfinite(embeddings)))
    print("KERNEL_OK")
</pallas_src>

<mosaic_0001>
module attributes {stable_mosaic.version = 11 : i64} {
  func.func @fused_encoder_kernel(%arg0: memref<16x32xf32, #tpu.memory_space<vmem>>, %arg1: memref<16x32xf32, #tpu.memory_space<vmem>>, %arg2: memref<16x16xf32, #tpu.memory_space<vmem>>, %arg3: memref<2x32xf32, #tpu.memory_space<vmem>>, %arg4: memref<2x32x96xf32, #tpu.memory_space<vmem>>, %arg5: memref<2x1x96xf32, #tpu.memory_space<vmem>>, %arg6: memref<2x32x32xf32, #tpu.memory_space<vmem>>, %arg7: memref<2x32x64xf32, #tpu.memory_space<vmem>>, %arg8: memref<2x1x64xf32, #tpu.memory_space<vmem>>, %arg9: memref<2x64x32xf32, #tpu.memory_space<vmem>>, %arg10: memref<2x6x32xf32, #tpu.memory_space<vmem>>, %arg11: memref<16x32xf32, #tpu.memory_space<vmem>>) attributes {dimension_semantics = [], scalar_prefetch = 0 : i64, scratch_operands = 0 : i64, tpu.core_type = #tpu.core_type<tc>} {
    %c0 = arith.constant 0 : index
    %c0_0 = arith.constant 0 : index
    %0 = vector.load %arg2[%c0, %c0_0] : memref<16x16xf32, #tpu.memory_space<vmem>>, vector<16x16xf32>
    %c0_1 = arith.constant 0 : index
    %c0_2 = arith.constant 0 : index
    %1 = vector.load %arg3[%c0_1, %c0_2] : memref<2x32xf32, #tpu.memory_space<vmem>>, vector<2x32xf32>
    %c0_3 = arith.constant 0 : index
    %c0_4 = arith.constant 0 : index
    %2 = vector.load %arg0[%c0_3, %c0_4] : memref<16x32xf32, #tpu.memory_space<vmem>>, vector<16x32xf32>
    %c0_5 = arith.constant 0 : index
    %c0_6 = arith.constant 0 : index
    %3 = vector.load %arg1[%c0_5, %c0_6] : memref<16x32xf32, #tpu.memory_space<vmem>>, vector<16x32xf32>
    %4 = arith.addf %2, %3 : vector<16x32xf32>
    %5 = vector.extract_strided_slice %1 {offsets = [0, 0], sizes = [1, 32], strides = [1, 1]} : vector<2x32xf32> to vector<1x32xf32>
    %6 = vector.extract_strided_slice %1 {offsets = [1, 0], sizes = [1, 32], strides = [1, 1]} : vector<2x32xf32> to vector<1x32xf32>
    %cst = arith.constant dense<0.000000e+00> : vector<16xf32>
    %7 = vector.multi_reduction <add>, %4, %cst [1] : vector<16x32xf32> to vector<16xf32>
    %8 = vector.shape_cast %7 : vector<16xf32> to vector<16x1xf32>
    %cst_7 = arith.constant 3.200000e+01 : f32
    %9 = vector.broadcast %cst_7 : f32 to vector<16x1xf32>
    %10 = arith.divf %8, %9 : vector<16x1xf32>
    %11 = vector.broadcast %10 : vector<16x1xf32> to vector<16x32xf32>
    %12 = arith.subf %4, %11 : vector<16x32xf32>
    %13 = vector.broadcast %10 : vector<16x1xf32> to vector<16x32xf32>
    %14 = arith.subf %4, %13 : vector<16x32xf32>
    %15 = arith.mulf %12, %14 : vector<16x32xf32>
    %cst_8 = arith.constant dense<0.000000e+00> : vector<16xf32>
    %16 = vector.multi_reduction <add>, %15, %cst_8 [1] : vector<16x32xf32> to vector<16xf32>
    %17 = vector.shape_cast %16 : vector<16xf32> to vector<16x1xf32>
    %cst_9 = arith.constant 3.200000e+01 : f32
    %18 = vector.broadcast %cst_9 : f32 to vector<16x1xf32>
    %19 = arith.divf %17, %18 : vector<16x1xf32>
    %20 = vector.broadcast %10 : vector<16x1xf32> to vector<16x32xf32>
    %21 = arith.subf %4, %20 : vector<16x32xf32>
    %cst_10 = arith.constant 9.99999996E-13 : f32
    %22 = vector.broadcast %cst_10 : f32 to vector<16x1xf32>
    %23 = arith.addf %19, %22 : vector<16x1xf32>
    %24 = math.rsqrt %23 : vector<16x1xf32>
    %25 = vector.broadcast %24 : vector<16x1xf32> to vector<16x32xf32>
    %26 = arith.mulf %21, %25 : vector<16x32xf32>
    %27 = vector.broadcast %5 : vector<1x32xf32> to vector<16x32xf32>
    %28 = arith.mulf %26, %27 : vector<16x32xf32>
    %29 = vector.broadcast %6 : vector<1x32xf32> to vector<16x32xf32>
    %30 = arith.addf %28, %29 : vector<16x32xf32>
    %c0_11 = arith.constant 0 : index
    %c0_12 = arith.constant 0 : index
    %c0_13 = arith.constant 0 : index
    %31 = vector.load %arg4[%c0_11, %c0_12, %c0_13] : memref<2x32x96xf32, #tpu.memory_space<vmem>>, vector<1x32x96xf32>
    %32 = vector.shape_cast %31 : vector<1x32x96xf32> to vector<32x96xf32>
    %c0_14 = arith.constant 0 : index
    %c0_15 = arith.constant 0 : index
    %c0_16 = arith.constant 0 : index
    %33 = vector.load %arg5[%c0_14, %c0_15, %c0_16] : memref<2x1x96xf32, #tpu.memory_space<vmem>>, vector<1x1x96xf32>
    %34 = vector.shape_cast %33 : vector<1x1x96xf32> to vector<1x96xf32>
    %c0_17 = arith.constant 0 : index
    %c0_18 = arith.constant 0 : index
    %c0_19 = arith.constant 0 : index
    %35 = vector.load %arg6[%c0_17, %c0_18, %c0_19] : memref<2x32x32xf32, #tpu.memory_space<vmem>>, vector<1x32x32xf32>
    %36 = vector.shape_cast %35 : vector<1x32x32xf32> to vector<32x32xf32>
    %c0_20 = arith.constant 0 : index
    %c0_21 = arith.constant 0 : index
    %c0_22 = arith.constant 0 : index
    %37 = vector.load %arg7[%c0_20, %c0_21, %c0_22] : memref<2x32x64xf32, #tpu.memory_space<vmem>>, vector<1x32x64xf32>
    %38 = vector.shape_cast %37 : vector<1x32x64xf32> to vector<32x64xf32>
    %c0_23 = arith.constant 0 : index
    %c0_24 = arith.constant 0 : index
    %c0_25 = arith.constant 0 : index
    %39 = vector.load %arg8[%c0_23, %c0_24, %c0_25] : memref<2x1x64xf32, #tpu.memory_space<vmem>>, vector<1x1x64xf32>
    %40 = vector.shape_cast %39 : vector<1x1x64xf32> to vector<1x64xf32>
    %c0_26 = arith.constant 0 : index
    %c0_27 = arith.constant 0 : index
    %c0_28 = arith.constant 0 : index
    %41 = vector.load %arg9[%c0_26, %c0_27, %c0_28] : memref<2x64x32xf32, #tpu.memory_space<vmem>>, vector<1x64x32xf32>
    %42 = vector.shape_cast %41 : vector<1x64x32xf32> to vector<64x32xf32>
    %c0_29 = arith.constant 0 : index
    %c0_30 = arith.constant 0 : index
    %c0_31 = arith.constant 0 : index
    %43 = vector.load %arg10[%c0_29, %c0_30, %c0_31] : memref<2x6x32xf32, #tpu.memory_space<vmem>>, vector<1x6x32xf32>
    %44 = vector.shape_cast %43 : vector<1x6x32xf32> to vector<6x32xf32>
    %45 = vector.extract_strided_slice %44 {offsets = [0, 0], sizes = [1, 32], strides = [1, 1]} : vector<6x32xf32> to vector<1x32xf32>
    %46 = vector.extract_strided_slice %44 {offsets = [1, 0], sizes = [1, 32], strides = [1, 1]} : vector<6x32xf32> to vector<1x32xf32>
    %47 = vector.extract_strided_slice %44 {offsets = [2, 0], sizes = [1, 32], strides = [1, 1]} : vector<6x32xf32> to vector<1x32xf32>
    %48 = vector.extract_strided_slice %44 {offsets = [3, 0], sizes = [1, 32], strides = [1, 1]} : vector<6x32xf32> to vector<1x32xf32>
    %49 = vector.extract_strided_slice %44 {offsets = [4, 0], sizes = [1, 32], strides = [1, 1]} : vector<6x32xf32> to vector<1x32xf32>
    %50 = vector.extract_strided_slice %44 {offsets = [5, 0], sizes = [1, 32], strides = [1, 1]} : vector<6x32xf32> to vector<1x32xf32>
    %cst_32 = arith.constant dense<0.000000e+00> : vector<16x96xf32>
    %51 = tpu.matmul %30, %32, %cst_32 {dimension_numbers = #tpu.dot_dimension_numbers<[1], [0], [0], [1], [0, 0, 1, 1], [], []>} : vector<16x32xf32>, vector<32x96xf32>, vector<16x96xf32> -> vector<16x96xf32>
    %52 = vector.broadcast %34 : vector<1x96xf32> to vector<16x96xf32>
    %53 = arith.addf %51, %52 : vector<16x96xf32>
    %54 = vector.extract_strided_slice %53 {offsets = [0, 0], sizes = [16, 8], strides = [1, 1]} : vector<16x96xf32> to vector<16x8xf32>
    %55 = vector.extract_strided_slice %53 {offsets = [0, 32], sizes = [16, 8], strides = [1, 1]} : vector<16x96xf32> to vector<16x8xf32>
    %56 = vector.extract_strided_slice %53 {offsets = [0, 64], sizes = [16, 8], strides = [1, 1]} : vector<16x96xf32> to vector<16x8xf32>
    "tpu.trace_start"() <{level = 10 : i32, message = "qd,kd->qk"}> : () -> ()
    %cst_33 = arith.constant dense<0.000000e+00> : vector<16x16xf32>
    %57 = tpu.matmul %54, %55, %cst_33 {dimension_numbers = #tpu.dot_dimension_numbers<[1], [1], [0], [0], [0, 0, 1, 0], [], []>} : vector<16x8xf32>, vector<16x8xf32>, vector<16x16xf32> -> vector<16x16xf32>
    "tpu.trace_stop"() : () -> ()
    %cst_34 = arith.constant 0.353553385 : f32
    %58 = vector.broadcast %cst_34 : f32 to vector<16x16xf32>
    %59 = arith.mulf %57, %58 : vector<16x16xf32>
    %60 = arith.addf %59, %0 : vector<16x16xf32>
    %cst_35 = arith.constant dense<0xFF800000> : vector<16xf32>
    %61 = vector.multi_reduction <maximumf>, %60, %cst_35 [1] : vector<16x16xf32> to vector<16xf32>
    %62 = vector.shape_cast %61 : vector<16xf32> to vector<16x1xf32>
    %63 = vector.broadcast %62 : vector<16x1xf32> to vector<16x16xf32>
    %64 = arith.subf %60, %63 : vector<16x16xf32>
    %65 = math.exp %64 : vector<16x16xf32>
    %cst_36 = arith.constant dense<0.000000e+00> : vector<16xf32>
    %66 = vector.multi_reduction <add>, %65, %cst_36 [1] : vector<16x16xf32> to vector<16xf32>
    %67 = vector.shape_cast %66 : vector<16xf32> to vector<16x1xf32>
    %68 = tpu.reciprocal %67 {approx = true} : vector<16x1xf32> -> vector<16x1xf32>
    %69 = vector.broadcast %68 : vector<16x1xf32> to vector<16x16xf32>
    %70 = arith.mulf %65, %69 : vector<16x16xf32>
    %cst_37 = arith.constant dense<0.000000e+00> : vector<16x8xf32>
    %71 = tpu.matmul %70, %56, %cst_37 {dimension_numbers = #tpu.dot_dimension_numbers<[1], [0], [0], [1], [0, 0, 1, 1], [], []>} : vector<16x16xf32>, vector<16x8xf32>, vector<16x8xf32> -> vector<16x8xf32>
    %72 = vector.extract_strided_slice %53 {offsets = [0, 8], sizes = [16, 8], strides = [1, 1]} : vector<16x96xf32> to vector<16x8xf32>
    %73 = vector.extract_strided_slice %53 {offsets = [0, 40], sizes = [16, 8], strides = [1, 1]} : vector<16x96xf32> to vector<16x8xf32>
    %74 = vector.extract_strided_slice %53 {offsets = [0, 72], sizes = [16, 8], strides = [1, 1]} : vector<16x96xf32> to vector<16x8xf32>
    "tpu.trace_start"() <{level = 10 : i32, message = "qd,kd->qk"}> : () -> ()
    %cst_38 = arith.constant dense<0.000000e+00> : vector<16x16xf32>
    %75 = tpu.matmul %72, %73, %cst_38 {dimension_numbers = #tpu.dot_dimension_numbers<[1], [1], [0], [0], [0, 0, 1, 0], [], []>} : vector<16x8xf32>, vector<16x8xf32>, vector<16x16xf32> -> vector<16x16xf32>
    "tpu.trace_stop"() : () -> ()
    %cst_39 = arith.constant 0.353553385 : f32
    %76 = vector.broadcast %cst_39 : f32 to vector<16x16xf32>
    %77 = arith.mulf %75, %76 : vector<16x16xf32>
    %78 = arith.addf %77, %0 : vector<16x16xf32>
    %cst_40 = arith.constant dense<0xFF800000> : vector<16xf32>
    %79 = vector.multi_reduction <maximumf>, %78, %cst_40 [1] : vector<16x16xf32> to vector<16xf32>
    %80 = vector.shape_cast %79 : vector<16xf32> to vector<16x1xf32>
    %81 = vector.broadcast %80 : vector<16x1xf32> to vector<16x16xf32>
    %82 = arith.subf %78, %81 : vector<16x16xf32>
    %83 = math.exp %82 : vector<16x16xf32>
    %cst_41 = arith.constant dense<0.000000e+00> : vector<16xf32>
    %84 = vector.multi_reduction <add>, %83, %cst_41 [1] : vector<16x16xf32> to vector<16xf32>
    %85 = vector.shape_cast %84 : vector<16xf32> to vector<16x1xf32>
    %86 = tpu.reciprocal %85 {approx = true} : vector<16x1xf32> -> vector<16x1xf32>
    %87 = vector.broadcast %86 : vector<16x1xf32> to vector<16x16xf32>
    %88 = arith.mulf %83, %87 : vector<16x16xf32>
    %cst_42 = arith.constant dense<0.000000e+00> : vector<16x8xf32>
    %89 = tpu.matmul %88, %74, %cst_42 {dimension_numbers = #tpu.dot_dimension_numbers<[1], [0], [0], [1], [0, 0, 1, 1], [], []>} : vector<16x16xf32>, vector<16x8xf32>, vector<16x8xf32> -> vector<16x8xf32>
    %90 = vector.extract_strided_slice %53 {offsets = [0, 16], sizes = [16, 8], strides = [1, 1]} : vector<16x96xf32> to vector<16x8xf32>
    %91 = vector.extract_strided_slice %53 {offsets = [0, 48], sizes = [16, 8], strides = [1, 1]} : vector<16x96xf32> to vector<16x8xf32>
    %92 = vector.extract_strided_slice %53 {offsets = [0, 80], sizes = [16, 8], strides = [1, 1]} : vector<16x96xf32> to vector<16x8xf32>
    "tpu.trace_start"() <{level = 10 : i32, message = "qd,kd->qk"}> : () -> ()
    %cst_43 = arith.constant dense<0.000000e+00> : vector<16x16xf32>
    %93 = tpu.matmul %90, %91, %cst_43 {dimension_numbers = #tpu.dot_dimension_numbers<[1], [1], [0], [0], [0, 0, 1, 0], [], []>} : vector<16x8xf32>, vector<16x8xf32>, vector<16x16xf32> -> vector<16x16xf32>
    "tpu.trace_stop"() : () -> ()
    %cst_44 = arith.constant 0.353553385 : f32
    %94 = vector.broadcast %cst_44 : f32 to vector<16x16xf32>
    %95 = arith.mulf %93, %94 : vector<16x16xf32>
    %96 = arith.addf %95, %0 : vector<16x16xf32>
    %cst_45 = arith.constant dense<0xFF800000> : vector<16xf32>
    %97 = vector.multi_reduction <maximumf>, %96, %cst_45 [1] : vector<16x16xf32> to vector<16xf32>
    %98 = vector.shape_cast %97 : vector<16xf32> to vector<16x1xf32>
    %99 = vector.broadcast %98 : vector<16x1xf32> to vector<16x16xf32>
    %100 = arith.subf %96, %99 : vector<16x16xf32>
    %101 = math.exp %100 : vector<16x16xf32>
    %cst_46 = arith.constant dense<0.000000e+00> : vector<16xf32>
    %102 = vector.multi_reduction <add>, %101, %cst_46 [1] : vector<16x16xf32> to vector<16xf32>
    %103 = vector.shape_cast %102 : vector<16xf32> to vector<16x1xf32>
    %104 = tpu.reciprocal %103 {approx = true} : vector<16x1xf32> -> vector<16x1xf32>
    %105 = vector.broadcast %104 : vector<16x1xf32> to vector<16x16xf32>
    %106 = arith.mulf %101, %105 : vector<16x16xf32>
    %cst_47 = arith.constant dense<0.000000e+00> : vector<16x8xf32>
    %107 = tpu.matmul %106, %92, %cst_47 {dimension_numbers = #tpu.dot_dimension_numbers<[1], [0], [0], [1], [0, 0, 1, 1], [], []>} : vector<16x16xf32>, vector<16x8xf32>, vector<16x8xf32> -> vector<16x8xf32>
    %108 = vector.extract_strided_slice %53 {offsets = [0, 24], sizes = [16, 8], strides = [1, 1]} : vector<16x96xf32> to vector<16x8xf32>
    %109 = vector.extract_strided_slice %53 {offsets = [0, 56], sizes = [16, 8], strides = [1, 1]} : vector<16x96xf32> to vector<16x8xf32>
    %110 = vector.extract_strided_slice %53 {offsets = [0, 88], sizes = [16, 8], strides = [1, 1]} : vector<16x96xf32> to vector<16x8xf32>
    "tpu.trace_start"() <{level = 10 : i32, message = "qd,kd->qk"}> : () -> ()
    %cst_48 = arith.constant dense<0.000000e+00> : vector<16x16xf32>
    %111 = tpu.matmul %108, %109, %cst_48 {dimension_numbers = #tpu.dot_dimension_numbers<[1], [1], [0], [0], [0, 0, 1, 0], [], []>} : vector<16x8xf32>, vector<16x8xf32>, vector<16x16xf32> -> vector<16x16xf32>
    "tpu.trace_stop"() : () -> ()
    %cst_49 = arith.constant 0.353553385 : f32
    %112 = vector.broadcast %cst_49 : f32 to vector<16x16xf32>
    %113 = arith.mulf %111, %112 : vector<16x16xf32>
    %114 = arith.addf %113, %0 : vector<16x16xf32>
    %cst_50 = arith.constant dense<0xFF800000> : vector<16xf32>
    %115 = vector.multi_reduction <maximumf>, %114, %cst_50 [1] : vector<16x16xf32> to vector<16xf32>
    %116 = vector.shape_cast %115 : vector<16xf32> to vector<16x1xf32>
    %117 = vector.broadcast %116 : vector<16x1xf32> to vector<16x16xf32>
    %118 = arith.subf %114, %117 : vector<16x16xf32>
    %119 = math.exp %118 : vector<16x16xf32>
    %cst_51 = arith.constant dense<0.000000e+00> : vector<16xf32>
    %120 = vector.multi_reduction <add>, %119, %cst_51 [1] : vector<16x16xf32> to vector<16xf32>
    %121 = vector.shape_cast %120 : vector<16xf32> to vector<16x1xf32>
    %122 = tpu.reciprocal %121 {approx = true} : vector<16x1xf32> -> vector<16x1xf32>
    %123 = vector.broadcast %122 : vector<16x1xf32> to vector<16x16xf32>
    %124 = arith.mulf %119, %123 : vector<16x16xf32>
    %cst_52 = arith.constant dense<0.000000e+00> : vector<16x8xf32>
    %125 = tpu.matmul %124, %110, %cst_52 {dimension_numbers = #tpu.dot_dimension_numbers<[1], [0], [0], [1], [0, 0, 1, 1], [], []>} : vector<16x16xf32>, vector<16x8xf32>, vector<16x8xf32> -> vector<16x8xf32>
    %126 = tpu.concatenate %71, %89, %107, %125 in 1 : vector<16x8xf32>, vector<16x8xf32>, vector<16x8xf32>, vector<16x8xf32> -> vector<16x32xf32>
    %cst_53 = arith.constant dense<0.000000e+00> : vector<16x32xf32>
    %127 = tpu.matmul %126, %36, %cst_53 {dimension_numbers = #tpu.dot_dimension_numbers<[1], [0], [0], [1], [0, 0, 1, 1], [], []>} : vector<16x32xf32>, vector<32x32xf32>, vector<16x32xf32> -> vector<16x32xf32>
    %128 = vector.broadcast %45 : vector<1x32xf32> to vector<16x32xf32>
    %129 = arith.addf %127, %128 : vector<16x32xf32>
    %130 = arith.addf %129, %30 : vector<16x32xf32>
    %cst_54 = arith.constant dense<0.000000e+00> : vector<16xf32>
    %131 = vector.multi_reduction <add>, %130, %cst_54 [1] : vector<16x32xf32> to vector<16xf32>
    %132 = vector.shape_cast %131 : vector<16xf32> to vector<16x1xf32>
    %cst_55 = arith.constant 3.200000e+01 : f32
    %133 = vector.broadcast %cst_55 : f32 to vector<16x1xf32>
    %134 = arith.divf %132, %133 : vector<16x1xf32>
    %135 = vector.broadcast %134 : vector<16x1xf32> to vector<16x32xf32>
    %136 = arith.subf %130, %135 : vector<16x32xf32>
    %137 = vector.broadcast %134 : vector<16x1xf32> to vector<16x32xf32>
    %138 = arith.subf %130, %137 : vector<16x32xf32>
    %139 = arith.mulf %136, %138 : vector<16x32xf32>
    %cst_56 = arith.constant dense<0.000000e+00> : vector<16xf32>
    %140 = vector.multi_reduction <add>, %139, %cst_56 [1] : vector<16x32xf32> to vector<16xf32>
    %141 = vector.shape_cast %140 : vector<16xf32> to vector<16x1xf32>
    %cst_57 = arith.constant 3.200000e+01 : f32
    %142 = vector.broadcast %cst_57 : f32 to vector<16x1xf32>
    %143 = arith.divf %141, %142 : vector<16x1xf32>
    %144 = vector.broadcast %134 : vector<16x1xf32> to vector<16x32xf32>
    %145 = arith.subf %130, %144 : vector<16x32xf32>
    %cst_58 = arith.constant 9.99999996E-13 : f32
    %146 = vector.broadcast %cst_58 : f32 to vector<16x1xf32>
    %147 = arith.addf %143, %146 : vector<16x1xf32>
    %148 = math.rsqrt %147 : vector<16x1xf32>
    %149 = vector.broadcast %148 : vector<16x1xf32> to vector<16x32xf32>
    %150 = arith.mulf %145, %149 : vector<16x32xf32>
    %151 = vector.broadcast %47 : vector<1x32xf32> to vector<16x32xf32>
    %152 = arith.mulf %150, %151 : vector<16x32xf32>
    %153 = vector.broadcast %48 : vector<1x32xf32> to vector<16x32xf32>
    %154 = arith.addf %152, %153 : vector<16x32xf32>
    %cst_59 = arith.constant dense<0.000000e+00> : vector<16x64xf32>
    %155 = tpu.matmul %154, %38, %cst_59 {dimension_numbers = #tpu.dot_dimension_numbers<[1], [0], [0], [1], [0, 0, 1, 1], [], []>} : vector<16x32xf32>, vector<32x64xf32>, vector<16x64xf32> -> vector<16x64xf32>
    %156 = vector.broadcast %40 : vector<1x64xf32> to vector<16x64xf32>
    %157 = arith.addf %155, %156 : vector<16x64xf32>
    %cst_60 = arith.constant 5.000000e-01 : f32
    %158 = vector.broadcast %cst_60 : f32 to vector<16x64xf32>
    %159 = arith.mulf %158, %157 : vector<16x64xf32>
    %cst_61 = arith.constant 4.471500e-02 : f32
    %160 = vector.broadcast %cst_61 : f32 to vector<16x64xf32>
    %161 = arith.mulf %160, %157 : vector<16x64xf32>
    %162 = arith.mulf %161, %157 : vector<16x64xf32>
    %163 = arith.mulf %162, %157 : vector<16x64xf32>
    %164 = arith.addf %157, %163 : vector<16x64xf32>
    %cst_62 = arith.constant 0.797884583 : f32
    %165 = vector.broadcast %cst_62 : f32 to vector<16x64xf32>
    %166 = arith.mulf %165, %164 : vector<16x64xf32>
    %167 = math.tanh %166 : vector<16x64xf32>
    %cst_63 = arith.constant 1.000000e+00 : f32
    %168 = vector.broadcast %cst_63 : f32 to vector<16x64xf32>
    %169 = arith.addf %168, %167 : vector<16x64xf32>
    %170 = arith.mulf %159, %169 : vector<16x64xf32>
    %cst_64 = arith.constant dense<0.000000e+00> : vector<16x32xf32>
    %171 = tpu.matmul %170, %42, %cst_64 {dimension_numbers = #tpu.dot_dimension_numbers<[1], [0], [0], [1], [0, 0, 1, 1], [], []>} : vector<16x64xf32>, vector<64x32xf32>, vector<16x32xf32> -> vector<16x32xf32>
    %172 = vector.broadcast %46 : vector<1x32xf32> to vector<16x32xf32>
    %173 = arith.addf %171, %172 : vector<16x32xf32>
    %174 = arith.addf %173, %154 : vector<16x32xf32>
    %cst_65 = arith.constant dense<0.000000e+00> : vector<16xf32>
    %175 = vector.multi_reduction <add>, %174, %cst_65 [1] : vector<16x32xf32> to vector<16xf32>
    %176 = vector.shape_cast %175 : vector<16xf32> to vector<16x1xf32>
    %cst_66 = arith.constant 3.200000e+01 : f32
    %177 = vector.broadcast %cst_66 : f32 to vector<16x1xf32>
    %178 = arith.divf %176, %177 : vector<16x1xf32>
    %179 = vector.broadcast %178 : vector<16x1xf32> to vector<16x32xf32>
    %180 = arith.subf %174, %179 : vector<16x32xf32>
    %181 = vector.broadcast %178 : vector<16x1xf32> to vector<16x32xf32>
    %182 = arith.subf %174, %181 : vector<16x32xf32>
    %183 = arith.mulf %180, %182 : vector<16x32xf32>
    %cst_67 = arith.constant dense<0.000000e+00> : vector<16xf32>
    %184 = vector.multi_reduction <add>, %183, %cst_67 [1] : vector<16x32xf32> to vector<16xf32>
    %185 = vector.shape_cast %184 : vector<16xf32> to vector<16x1xf32>
    %cst_68 = arith.constant 3.200000e+01 : f32
    %186 = vector.broadcast %cst_68 : f32 to vector<16x1xf32>
    %187 = arith.divf %185, %186 : vector<16x1xf32>
    %188 = vector.broadcast %178 : vector<16x1xf32> to vector<16x32xf32>
    %189 = arith.subf %174, %188 : vector<16x32xf32>
    %cst_69 = arith.constant 9.99999996E-13 : f32
    %190 = vector.broadcast %cst_69 : f32 to vector<16x1xf32>
    %191 = arith.addf %187, %190 : vector<16x1xf32>
    %192 = math.rsqrt %191 : vector<16x1xf32>
    %193 = vector.broadcast %192 : vector<16x1xf32> to vector<16x32xf32>
    %194 = arith.mulf %189, %193 : vector<16x32xf32>
    %195 = vector.broadcast %49 : vector<1x32xf32> to vector<16x32xf32>
    %196 = arith.mulf %194, %195 : vector<16x32xf32>
    %197 = vector.broadcast %50 : vector<1x32xf32> to vector<16x32xf32>
    %198 = arith.addf %196, %197 : vector<16x32xf32>
    %c1 = arith.constant 1 : index
    %c0_70 = arith.constant 0 : index
    %c0_71 = arith.constant 0 : index
    %199 = vector.load %arg4[%c1, %c0_70, %c0_71] : memref<2x32x96xf32, #tpu.memory_space<vmem>>, vector<1x32x96xf32>
    %200 = vector.shape_cast %199 : vector<1x32x96xf32> to vector<32x96xf32>
    %c1_72 = arith.constant 1 : index
    %c0_73 = arith.constant 0 : index
    %c0_74 = arith.constant 0 : index
    %201 = vector.load %arg5[%c1_72, %c0_73, %c0_74] : memref<2x1x96xf32, #tpu.memory_space<vmem>>, vector<1x1x96xf32>
    %202 = vector.shape_cast %201 : vector<1x1x96xf32> to vector<1x96xf32>
    %c1_75 = arith.constant 1 : index
    %c0_76 = arith.constant 0 : index
    %c0_77 = arith.constant 0 : index
    %203 = vector.load %arg6[%c1_75, %c0_76, %c0_77] : memref<2x32x32xf32, #tpu.memory_space<vmem>>, vector<1x32x32xf32>
    %204 = vector.shape_cast %203 : vector<1x32x32xf32> to vector<32x32xf32>
    %c1_78 = arith.constant 1 : index
    %c0_79 = arith.constant 0 : index
    %c0_80 = arith.constant 0 : index
    %205 = vector.load %arg7[%c1_78, %c0_79, %c0_80] : memref<2x32x64xf32, #tpu.memory_space<vmem>>, vector<1x32x64xf32>
    %206 = vector.shape_cast %205 : vector<1x32x64xf32> to vector<32x64xf32>
    %c1_81 = arith.constant 1 : index
    %c0_82 = arith.constant 0 : index
    %c0_83 = arith.constant 0 : index
    %207 = vector.load %arg8[%c1_81, %c0_82, %c0_83] : memref<2x1x64xf32, #tpu.memory_space<vmem>>, vector<1x1x64xf32>
    %208 = vector.shape_cast %207 : vector<1x1x64xf32> to vector<1x64xf32>
    %c1_84 = arith.constant 1 : index
    %c0_85 = arith.constant 0 : index
    %c0_86 = arith.constant 0 : index
    %209 = vector.load %arg9[%c1_84, %c0_85, %c0_86] : memref<2x64x32xf32, #tpu.memory_space<vmem>>, vector<1x64x32xf32>
    %210 = vector.shape_cast %209 : vector<1x64x32xf32> to vector<64x32xf32>
    %c1_87 = arith.constant 1 : index
    %c0_88 = arith.constant 0 : index
    %c0_89 = arith.constant 0 : index
    %211 = vector.load %arg10[%c1_87, %c0_88, %c0_89] : memref<2x6x32xf32, #tpu.memory_space<vmem>>, vector<1x6x32xf32>
    %212 = vector.shape_cast %211 : vector<1x6x32xf32> to vector<6x32xf32>
    %213 = vector.extract_strided_slice %212 {offsets = [0, 0], sizes = [1, 32], strides = [1, 1]} : vector<6x32xf32> to vector<1x32xf32>
    %214 = vector.extract_strided_slice %212 {offsets = [1, 0], sizes = [1, 32], strides = [1, 1]} : vector<6x32xf32> to vector<1x32xf32>
    %215 = vector.extract_strided_slice %212 {offsets = [2, 0], sizes = [1, 32], strides = [1, 1]} : vector<6x32xf32> to vector<1x32xf32>
    %216 = vector.extract_strided_slice %212 {offsets = [3, 0], sizes = [1, 32], strides = [1, 1]} : vector<6x32xf32> to vector<1x32xf32>
    %217 = vector.extract_strided_slice %212 {offsets = [4, 0], sizes = [1, 32], strides = [1, 1]} : vector<6x32xf32> to vector<1x32xf32>
    %218 = vector.extract_strided_slice %212 {offsets = [5, 0], sizes = [1, 32], strides = [1, 1]} : vector<6x32xf32> to vector<1x32xf32>
    %cst_90 = arith.constant dense<0.000000e+00> : vector<16x96xf32>
    %219 = tpu.matmul %198, %200, %cst_90 {dimension_numbers = #tpu.dot_dimension_numbers<[1], [0], [0], [1], [0, 0, 1, 1], [], []>} : vector<16x32xf32>, vector<32x96xf32>, vector<16x96xf32> -> vector<16x96xf32>
    %220 = vector.broadcast %202 : vector<1x96xf32> to vector<16x96xf32>
    %221 = arith.addf %219, %220 : vector<16x96xf32>
    %222 = vector.extract_strided_slice %221 {offsets = [0, 0], sizes = [16, 8], strides = [1, 1]} : vector<16x96xf32> to vector<16x8xf32>
    %223 = vector.extract_strided_slice %221 {offsets = [0, 32], sizes = [16, 8], strides = [1, 1]} : vector<16x96xf32> to vector<16x8xf32>
    %224 = vector.extract_strided_slice %221 {offsets = [0, 64], sizes = [16, 8], strides = [1, 1]} : vector<16x96xf32> to vector<16x8xf32>
    "tpu.trace_start"() <{level = 10 : i32, message = "qd,kd->qk"}> : () -> ()
    %cst_91 = arith.constant dense<0.000000e+00> : vector<16x16xf32>
    %225 = tpu.matmul %222, %223, %cst_91 {dimension_numbers = #tpu.dot_dimension_numbers<[1], [1], [0], [0], [0, 0, 1, 0], [], []>} : vector<16x8xf32>, vector<16x8xf32>, vector<16x16xf32> -> vector<16x16xf32>
    "tpu.trace_stop"() : () -> ()
    %cst_92 = arith.constant 0.353553385 : f32
    %226 = vector.broadcast %cst_92 : f32 to vector<16x16xf32>
    %227 = arith.mulf %225, %226 : vector<16x16xf32>
    %228 = arith.addf %227, %0 : vector<16x16xf32>
    %cst_93 = arith.constant dense<0xFF800000> : vector<16xf32>
    %229 = vector.multi_reduction <maximumf>, %228, %cst_93 [1] : vector<16x16xf32> to vector<16xf32>
    %230 = vector.shape_cast %229 : vector<16xf32> to vector<16x1xf32>
    %231 = vector.broadcast %230 : vector<16x1xf32> to vector<16x16xf32>
    %232 = arith.subf %228, %231 : vector<16x16xf32>
    %233 = math.exp %232 : vector<16x16xf32>
    %cst_94 = arith.constant dense<0.000000e+00> : vector<16xf32>
    %234 = vector.multi_reduction <add>, %233, %cst_94 [1] : vector<16x16xf32> to vector<16xf32>
    %235 = vector.shape_cast %234 : vector<16xf32> to vector<16x1xf32>
    %236 = tpu.reciprocal %235 {approx = true} : vector<16x1xf32> -> vector<16x1xf32>
    %237 = vector.broadcast %236 : vector<16x1xf32> to vector<16x16xf32>
    %238 = arith.mulf %233, %237 : vector<16x16xf32>
    %cst_95 = arith.constant dense<0.000000e+00> : vector<16x8xf32>
    %239 = tpu.matmul %238, %224, %cst_95 {dimension_numbers = #tpu.dot_dimension_numbers<[1], [0], [0], [1], [0, 0, 1, 1], [], []>} : vector<16x16xf32>, vector<16x8xf32>, vector<16x8xf32> -> vector<16x8xf32>
    %240 = vector.extract_strided_slice %221 {offsets = [0, 8], sizes = [16, 8], strides = [1, 1]} : vector<16x96xf32> to vector<16x8xf32>
    %241 = vector.extract_strided_slice %221 {offsets = [0, 40], sizes = [16, 8], strides = [1, 1]} : vector<16x96xf32> to vector<16x8xf32>
    %242 = vector.extract_strided_slice %221 {offsets = [0, 72], sizes = [16, 8], strides = [1, 1]} : vector<16x96xf32> to vector<16x8xf32>
    "tpu.trace_start"() <{level = 10 : i32, message = "qd,kd->qk"}> : () -> ()
    %cst_96 = arith.constant dense<0.000000e+00> : vector<16x16xf32>
    %243 = tpu.matmul %240, %241, %cst_96 {dimension_numbers = #tpu.dot_dimension_numbers<[1], [1], [0], [0], [0, 0, 1, 0], [], []>} : vector<16x8xf32>, vector<16x8xf32>, vector<16x16xf32> -> vector<16x16xf32>
    "tpu.trace_stop"() : () -> ()
    %cst_97 = arith.constant 0.353553385 : f32
    %244 = vector.broadcast %cst_97 : f32 to vector<16x16xf32>
    %245 = arith.mulf %243, %244 : vector<16x16xf32>
    %246 = arith.addf %245, %0 : vector<16x16xf32>
    %cst_98 = arith.constant dense<0xFF800000> : vector<16xf32>
    %247 = vector.multi_reduction <maximumf>, %246, %cst_98 [1] : vector<16x16xf32> to vector<16xf32>
    %248 = vector.shape_cast %247 : vector<16xf32> to vector<16x1xf32>
    %249 = vector.broadcast %248 : vector<16x1xf32> to vector<16x16xf32>
    %250 = arith.subf %246, %249 : vector<16x16xf32>
    %251 = math.exp %250 : vector<16x16xf32>
    %cst_99 = arith.constant dense<0.000000e+00> : vector<16xf32>
    %252 = vector.multi_reduction <add>, %251, %cst_99 [1] : vector<16x16xf32> to vector<16xf32>
    %253 = vector.shape_cast %252 : vector<16xf32> to vector<16x1xf32>
    %254 = tpu.reciprocal %253 {approx = true} : vector<16x1xf32> -> vector<16x1xf32>
    %255 = vector.broadcast %254 : vector<16x1xf32> to vector<16x16xf32>
    %256 = arith.mulf %251, %255 : vector<16x16xf32>
    %cst_100 = arith.constant dense<0.000000e+00> : vector<16x8xf32>
    %257 = tpu.matmul %256, %242, %cst_100 {dimension_numbers = #tpu.dot_dimension_numbers<[1], [0], [0], [1], [0, 0, 1, 1], [], []>} : vector<16x16xf32>, vector<16x8xf32>, vector<16x8xf32> -> vector<16x8xf32>
    %258 = vector.extract_strided_slice %221 {offsets = [0, 16], sizes = [16, 8], strides = [1, 1]} : vector<16x96xf32> to vector<16x8xf32>
    %259 = vector.extract_strided_slice %221 {offsets = [0, 48], sizes = [16, 8], strides = [1, 1]} : vector<16x96xf32> to vector<16x8xf32>
    %260 = vector.extract_strided_slice %221 {offsets = [0, 80], sizes = [16, 8], strides = [1, 1]} : vector<16x96xf32> to vector<16x8xf32>
    "tpu.trace_start"() <{level = 10 : i32, message = "qd,kd->qk"}> : () -> ()
    %cst_101 = arith.constant dense<0.000000e+00> : vector<16x16xf32>
    %261 = tpu.matmul %258, %259, %cst_101 {dimension_numbers = #tpu.dot_dimension_numbers<[1], [1], [0], [0], [0, 0, 1, 0], [], []>} : vector<16x8xf32>, vector<16x8xf32>, vector<16x16xf32> -> vector<16x16xf32>
    "tpu.trace_stop"() : () -> ()
    %cst_102 = arith.constant 0.353553385 : f32
    %262 = vector.broadcast %cst_102 : f32 to vector<16x16xf32>
    %263 = arith.mulf %261, %262 : vector<16x16xf32>
    %264 = arith.addf %263, %0 : vector<16x16xf32>
    %cst_103 = arith.constant dense<0xFF800000> : vector<16xf32>
    %265 = vector.multi_reduction <maximumf>, %264, %cst_103 [1] : vector<16x16xf32> to vector<16xf32>
    %266 = vector.shape_cast %265 : vector<16xf32> to vector<16x1xf32>
    %267 = vector.broadcast %266 : vector<16x1xf32> to vector<16x16xf32>
    %268 = arith.subf %264, %267 : vector<16x16xf32>
    %269 = math.exp %268 : vector<16x16xf32>
    %cst_104 = arith.constant dense<0.000000e+00> : vector<16xf32>
    %270 = vector.multi_reduction <add>, %269, %cst_104 [1] : vector<16x16xf32> to vector<16xf32>
    %271 = vector.shape_cast %270 : vector<16xf32> to vector<16x1xf32>
    %272 = tpu.reciprocal %271 {approx = true} : vector<16x1xf32> -> vector<16x1xf32>
    %273 = vector.broadcast %272 : vector<16x1xf32> to vector<16x16xf32>
    %274 = arith.mulf %269, %273 : vector<16x16xf32>
    %cst_105 = arith.constant dense<0.000000e+00> : vector<16x8xf32>
    %275 = tpu.matmul %274, %260, %cst_105 {dimension_numbers = #tpu.dot_dimension_numbers<[1], [0], [0], [1], [0, 0, 1, 1], [], []>} : vector<16x16xf32>, vector<16x8xf32>, vector<16x8xf32> -> vector<16x8xf32>
    %276 = vector.extract_strided_slice %221 {offsets = [0, 24], sizes = [16, 8], strides = [1, 1]} : vector<16x96xf32> to vector<16x8xf32>
    %277 = vector.extract_strided_slice %221 {offsets = [0, 56], sizes = [16, 8], strides = [1, 1]} : vector<16x96xf32> to vector<16x8xf32>
    %278 = vector.extract_strided_slice %221 {offsets = [0, 88], sizes = [16, 8], strides = [1, 1]} : vector<16x96xf32> to vector<16x8xf32>
    "tpu.trace_start"() <{level = 10 : i32, message = "qd,kd->qk"}> : () -> ()
    %cst_106 = arith.constant dense<0.000000e+00> : vector<16x16xf32>
    %279 = tpu.matmul %276, %277, %cst_106 {dimension_numbers = #tpu.dot_dimension_numbers<[1], [1], [0], [0], [0, 0, 1, 0], [], []>} : vector<16x8xf32>, vector<16x8xf32>, vector<16x16xf32> -> vector<16x16xf32>
    "tpu.trace_stop"() : () -> ()
    %cst_107 = arith.constant 0.353553385 : f32
    %280 = vector.broadcast %cst_107 : f32 to vector<16x16xf32>
    %281 = arith.mulf %279, %280 : vector<16x16xf32>
    %282 = arith.addf %281, %0 : vector<16x16xf32>
    %cst_108 = arith.constant dense<0xFF800000> : vector<16xf32>
    %283 = vector.multi_reduction <maximumf>, %282, %cst_108 [1] : vector<16x16xf32> to vector<16xf32>
    %284 = vector.shape_cast %283 : vector<16xf32> to vector<16x1xf32>
    %285 = vector.broadcast %284 : vector<16x1xf32> to vector<16x16xf32>
    %286 = arith.subf %282, %285 : vector<16x16xf32>
    %287 = math.exp %286 : vector<16x16xf32>
    %cst_109 = arith.constant dense<0.000000e+00> : vector<16xf32>
    %288 = vector.multi_reduction <add>, %287, %cst_109 [1] : vector<16x16xf32> to vector<16xf32>
    %289 = vector.shape_cast %288 : vector<16xf32> to vector<16x1xf32>
    %290 = tpu.reciprocal %289 {approx = true} : vector<16x1xf32> -> vector<16x1xf32>
    %291 = vector.broadcast %290 : vector<16x1xf32> to vector<16x16xf32>
    %292 = arith.mulf %287, %291 : vector<16x16xf32>
    %cst_110 = arith.constant dense<0.000000e+00> : vector<16x8xf32>
    %293 = tpu.matmul %292, %278, %cst_110 {dimension_numbers = #tpu.dot_dimension_numbers<[1], [0], [0], [1], [0, 0, 1, 1], [], []>} : vector<16x16xf32>, vector<16x8xf32>, vector<16x8xf32> -> vector<16x8xf32>
    %294 = tpu.concatenate %239, %257, %275, %293 in 1 : vector<16x8xf32>, vector<16x8xf32>, vector<16x8xf32>, vector<16x8xf32> -> vector<16x32xf32>
    %cst_111 = arith.constant dense<0.000000e+00> : vector<16x32xf32>
    %295 = tpu.matmul %294, %204, %cst_111 {dimension_numbers = #tpu.dot_dimension_numbers<[1], [0], [0], [1], [0, 0, 1, 1], [], []>} : vector<16x32xf32>, vector<32x32xf32>, vector<16x32xf32> -> vector<16x32xf32>
    %296 = vector.broadcast %213 : vector<1x32xf32> to vector<16x32xf32>
    %297 = arith.addf %295, %296 : vector<16x32xf32>
    %298 = arith.addf %297, %198 : vector<16x32xf32>
    %cst_112 = arith.constant dense<0.000000e+00> : vector<16xf32>
    %299 = vector.multi_reduction <add>, %298, %cst_112 [1] : vector<16x32xf32> to vector<16xf32>
    %300 = vector.shape_cast %299 : vector<16xf32> to vector<16x1xf32>
    %cst_113 = arith.constant 3.200000e+01 : f32
    %301 = vector.broadcast %cst_113 : f32 to vector<16x1xf32>
    %302 = arith.divf %300, %301 : vector<16x1xf32>
    %303 = vector.broadcast %302 : vector<16x1xf32> to vector<16x32xf32>
    %304 = arith.subf %298, %303 : vector<16x32xf32>
    %305 = vector.broadcast %302 : vector<16x1xf32> to vector<16x32xf32>
    %306 = arith.subf %298, %305 : vector<16x32xf32>
    %307 = arith.mulf %304, %306 : vector<16x32xf32>
    %cst_114 = arith.constant dense<0.000000e+00> : vector<16xf32>
    %308 = vector.multi_reduction <add>, %307, %cst_114 [1] : vector<16x32xf32> to vector<16xf32>
    %309 = vector.shape_cast %308 : vector<16xf32> to vector<16x1xf32>
    %cst_115 = arith.constant 3.200000e+01 : f32
    %310 = vector.broadcast %cst_115 : f32 to vector<16x1xf32>
    %311 = arith.divf %309, %310 : vector<16x1xf32>
    %312 = vector.broadcast %302 : vector<16x1xf32> to vector<16x32xf32>
    %313 = arith.subf %298, %312 : vector<16x32xf32>
    %cst_116 = arith.constant 9.99999996E-13 : f32
    %314 = vector.broadcast %cst_116 : f32 to vector<16x1xf32>
    %315 = arith.addf %311, %314 : vector<16x1xf32>
    %316 = math.rsqrt %315 : vector<16x1xf32>
    %317 = vector.broadcast %316 : vector<16x1xf32> to vector<16x32xf32>
    %318 = arith.mulf %313, %317 : vector<16x32xf32>
    %319 = vector.broadcast %215 : vector<1x32xf32> to vector<16x32xf32>
    %320 = arith.mulf %318, %319 : vector<16x32xf32>
    %321 = vector.broadcast %216 : vector<1x32xf32> to vector<16x32xf32>
    %322 = arith.addf %320, %321 : vector<16x32xf32>
    %cst_117 = arith.constant dense<0.000000e+00> : vector<16x64xf32>
    %323 = tpu.matmul %322, %206, %cst_117 {dimension_numbers = #tpu.dot_dimension_numbers<[1], [0], [0], [1], [0, 0, 1, 1], [], []>} : vector<16x32xf32>, vector<32x64xf32>, vector<16x64xf32> -> vector<16x64xf32>
    %324 = vector.broadcast %208 : vector<1x64xf32> to vector<16x64xf32>
    %325 = arith.addf %323, %324 : vector<16x64xf32>
    %cst_118 = arith.constant 5.000000e-01 : f32
    %326 = vector.broadcast %cst_118 : f32 to vector<16x64xf32>
    %327 = arith.mulf %326, %325 : vector<16x64xf32>
    %cst_119 = arith.constant 4.471500e-02 : f32
    %328 = vector.broadcast %cst_119 : f32 to vector<16x64xf32>
    %329 = arith.mulf %328, %325 : vector<16x64xf32>
    %330 = arith.mulf %329, %325 : vector<16x64xf32>
    %331 = arith.mulf %330, %325 : vector<16x64xf32>
    %332 = arith.addf %325, %331 : vector<16x64xf32>
    %cst_120 = arith.constant 0.797884583 : f32
    %333 = vector.broadcast %cst_120 : f32 to vector<16x64xf32>
    %334 = arith.mulf %333, %332 : vector<16x64xf32>
    %335 = math.tanh %334 : vector<16x64xf32>
    %cst_121 = arith.constant 1.000000e+00 : f32
    %336 = vector.broadcast %cst_121 : f32 to vector<16x64xf32>
    %337 = arith.addf %336, %335 : vector<16x64xf32>
    %338 = arith.mulf %327, %337 : vector<16x64xf32>
    %cst_122 = arith.constant dense<0.000000e+00> : vector<16x32xf32>
    %339 = tpu.matmul %338, %210, %cst_122 {dimension_numbers = #tpu.dot_dimension_numbers<[1], [0], [0], [1], [0, 0, 1, 1], [], []>} : vector<16x64xf32>, vector<64x32xf32>, vector<16x32xf32> -> vector<16x32xf32>
    %340 = vector.broadcast %214 : vector<1x32xf32> to vector<16x32xf32>
    %341 = arith.addf %339, %340 : vector<16x32xf32>
    %342 = arith.addf %341, %322 : vector<16x32xf32>
    %cst_123 = arith.constant dense<0.000000e+00> : vector<16xf32>
    %343 = vector.multi_reduction <add>, %342, %cst_123 [1] : vector<16x32xf32> to vector<16xf32>
    %344 = vector.shape_cast %343 : vector<16xf32> to vector<16x1xf32>
    %cst_124 = arith.constant 3.200000e+01 : f32
    %345 = vector.broadcast %cst_124 : f32 to vector<16x1xf32>
    %346 = arith.divf %344, %345 : vector<16x1xf32>
    %347 = vector.broadcast %346 : vector<16x1xf32> to vector<16x32xf32>
    %348 = arith.subf %342, %347 : vector<16x32xf32>
    %349 = vector.broadcast %346 : vector<16x1xf32> to vector<16x32xf32>
    %350 = arith.subf %342, %349 : vector<16x32xf32>
    %351 = arith.mulf %348, %350 : vector<16x32xf32>
    %cst_125 = arith.constant dense<0.000000e+00> : vector<16xf32>
    %352 = vector.multi_reduction <add>, %351, %cst_125 [1] : vector<16x32xf32> to vector<16xf32>
    %353 = vector.shape_cast %352 : vector<16xf32> to vector<16x1xf32>
    %cst_126 = arith.constant 3.200000e+01 : f32
    %354 = vector.broadcast %cst_126 : f32 to vector<16x1xf32>
    %355 = arith.divf %353, %354 : vector<16x1xf32>
    %356 = vector.broadcast %346 : vector<16x1xf32> to vector<16x32xf32>
    %357 = arith.subf %342, %356 : vector<16x32xf32>
    %cst_127 = arith.constant 9.99999996E-13 : f32
    %358 = vector.broadcast %cst_127 : f32 to vector<16x1xf32>
    %359 = arith.addf %355, %358 : vector<16x1xf32>
    %360 = math.rsqrt %359 : vector<16x1xf32>
    %361 = vector.broadcast %360 : vector<16x1xf32> to vector<16x32xf32>
    %362 = arith.mulf %357, %361 : vector<16x32xf32>
    %363 = vector.broadcast %217 : vector<1x32xf32> to vector<16x32xf32>
    %364 = arith.mulf %362, %363 : vector<16x32xf32>
    %365 = vector.broadcast %218 : vector<1x32xf32> to vector<16x32xf32>
    %366 = arith.addf %364, %365 : vector<16x32xf32>
    %c0_128 = arith.constant 0 : index
    %c0_129 = arith.constant 0 : index
    %367 = vector.load %arg11[%c0_128, %c0_129] : memref<16x32xf32, #tpu.memory_space<vmem>>, vector<16x32xf32>
    tpu.vector_store %arg11[%c0_128, %c0_129], %366 {strides = array<i32>} : memref<16x32xf32, #tpu.memory_space<vmem>>, vector<16x32xf32>,
    return
  }
}

</mosaic_0001>

<bundles_post_ra>
// kernel: rnabert_for_ssp_forward.1
= control target key start
LH: loop header
LB: loop body
LE: loop exit
PB: predicated region body
PF: predicated region fallthrough
CT: control target
= control target key end

     0   :  { %vm48_vm0 = vcmask 261120   ;;  %s2385_s0 = inlined_call_operand.vmem [shape: f32[16,32], index: 0, kind: input, shape index: {}]   ;;  %s2386_s1 = inlined_call_operand.vmem [shape: f32[16,32], index: 1, kind: input, shape index: {}]   ;;  %s2387_s2 = inlined_call_operand.vmem [shape: f32[16,16], index: 2, kind: input, shape index: {}]   ;;  %s2388_s3 = inlined_call_operand.vmem [shape: f32[2,32], index: 3, kind: input, shape index: {}]   ;;  %s2389_s4 = inlined_call_operand.vmem [shape: f32[2,32,96], index: 4, kind: input, shape index: {}]   ;;  %s2390_s5 = inlined_call_operand.vmem [shape: f32[2,1,96], index: 5, kind: input, shape index: {}]   ;;  %s2391_s6 = inlined_call_operand.vmem [shape: f32[2,32,32], index: 6, kind: input, shape index: {}]   ;;  %s2392_s7 = inlined_call_operand.vmem [shape: f32[2,32,64], index: 7, kind: input, shape index: {}]   ;;  %s2393_s8 = inlined_call_operand.vmem [shape: f32[2,1,64], index: 8, kind: input, shape index: {}]   ;;  %s2394_s9 = inlined_call_operand.vmem [shape: f32[2,64,32], index: 9, kind: input, shape index: {}]   ;;  %s2395_s10 = inlined_call_operand.vmem [shape: f32[2,6,32], index: 10, kind: input, shape index: {}]   ;;  %s2396_s11 = inlined_call_operand.hbm [shape: f32[16,32], index: 11, kind: output, shape index: {}]  }
   0x1   :  { %v42_v0 = vld [vmem:[%s2385_s0] sm:$0xff]  ;;  %v43_v2 = vld [vmem:[%s2385_s0 + $0x8] sm:$0xff] }
   0x2   :  { %v44_v1 = vld [vmem:[%s2386_s1] sm:$0xff]  ;;  %v45_v4 = vld [vmem:[%s2386_s1 + $0x8] sm:$0xff] }
   0x3   :  { %v46_v3 = vadd.f32 %v44_v1, %v42_v0 }
   0x4   :  { %16 = vsyncpa [#allocation3], 0  ;;  %v47_v6 = vadd.f32 %v45_v4, %v43_v2  ;;  %v1799_v8 = vmov 32.0   ;;  %v109_v25 = vld [vmem:[%s2389_s4 + $0x18] sm:$0xff]  ;;  %v108_v26 = vld [vmem:[%s2389_s4 + $0x10] sm:$0xff]  ;;  %s1800_s15 = smov 88  }
   0x5   :  { %v49_v5 = vsel %vm48_vm0, %v46_v3, 0.0  ;;  %1679 = vrcp.f32 %v1799_v8  ;;  %150 = vmatpush.msra.mxu0 %v109_v25  ;;  %v107_v27 = vld [vmem:[%s2389_s4 + $0x8] sm:$0xff]  ;;  %v106_v28 = vld [vmem:[%s2389_s4] sm:$0xff]  ;;  %s1801_s16 = smov 96   ;;  %s1802_s17 = smov 80   ;;  %vm167_vm8 = vcmask 64512  }
   0x6   :  { %50 = vadd.xlane.f32.xlu0 %v49_v5  ;;  %v52_v7 = vsel %vm48_vm0, %v47_v6, 0.0  ;;  %v41_v40 = vld [vmem:[%s2388_s3] sm:$0x3]  ;;  %s1803_s18 = smov 72   ;;  %s1804_s19 = smov 112   ;;  %vm203_vm9 = vcmask 130048  }
   0x7   :  { %151 = vmatpush.msra.mxu0 %v108_v26  ;;  %v100_v44 = vperm.slane %v41_v40, 0  ;;  %v103_v48 = vperm.slane %v41_v40, 1  ;;  %v1675_v58 = vld [vmem:[%s2390_s5] ss:$0 sm:$0xff]  ;;  %s1805_s20 = smov 120   ;;  %s1806_s21 = smov 104  }
   0x8   :  { %s1808_s1 = smov 56   ;;  %s1809_s25 = smov 40   ;;  %vm589_vm10 = vcmask 195584  }
   0x9   :  { %152 = vmatpush.msra.mxu0 %v107_v27  ;;  %s1810_s26 = smov 48   ;;  %s1811_s27 = smov 8  }
   0xa   :  { %s1812_s28 = smov 24   ;;  %s2397_s29 = smov 16  }
   0xb   :  { %v1680_v9 = vpop.eup %1679  ;;  %153 = vmatpush.msra.mxu0 %v106_v28 }
   0xc   :  { %v56_v10 = vmul.f32 32.0, %v1680_v9  ;;  %vm60_vm1 = vweird.f32 %v1680_v9 }
   0xe   :  { %53 = vadd.xlane.f32.xlu0 %v52_v7  ;;  %v57_v11 = vsub.f32 1.0, %v56_v10 }
  0x10   :  { %v58_v12 = vmul.f32 %v1680_v9, %v57_v11 }
  0x12   :  { %v59_v13 = vadd.f32 %v1680_v9, %v58_v12 }
  0x14   :  { %v1890_v14 = vsel %vm60_vm1, %v1680_v9, %v59_v13 }
  0x79   :  { %v51_v15 = vpop.xlane.xlu0 %50 }
  0x7a   :  { %v62_v16 = vmul.f32 %v1890_v14, %v51_v15  ;;  %v1977_v15 = vld [vmem:[%s2387_s2] sm:$0xff] }
  0x7c   :  { %v64_v17 = vsub.f32 %v46_v3, %v62_v16 }
  0x7e   :  { %v66_v18 = vmul.f32 %v64_v17, %v64_v17 }
  0x80   :  { %v68_v19 = vsel %vm48_vm0, %v66_v18, 0.0 }
  0x81   :  { %69 = vadd.xlane.f32.xlu1 %v68_v19  ;;  %v54_v20 = vpop.xlane.xlu0 %53 }
  0x82   :  { %v63_v21 = vmul.f32 %v1890_v14, %v54_v20  ;;  %v1984_v20 = vld [vmem:[%s2387_s2 + $0x8] sm:$0xff]  ;;  %s1807_s2 = smov 64  }
  0x84   :  { %v65_v22 = vsub.f32 %v47_v6, %v63_v21 }
  0x86   :  { %v67_v23 = vmul.f32 %v65_v22, %v65_v22 }
  0x88   :  { %v71_v24 = vsel %vm48_vm0, %v67_v23, 0.0 }
  0x89   :  { %72 = vadd.xlane.f32.xlu1 %v71_v24 }
  0xf4   :  { %v70_v29 = vpop.xlane.xlu1 %69 }
  0xf5   :  { %v74_v30 = vmul.f32 %v70_v29, %v1890_v14 }
  0xf7   :  { %v76_v31 = vadd.f32 1e-12, %v74_v30 }
  0xf9   :  { %1681 = vrsqrt.f32 %v76_v31  ;;  %vm84_vm3 = vweird.f32 %v76_v31 }
  0xfc   :  { %v73_v32 = vpop.xlane.xlu1 %72 }
  0xfd   :  { %v75_v33 = vmul.f32 %v73_v32, %v1890_v14 }
  0xff   :  { %v1682_v34 = vpop.eup %1681  ;;  %v77_v35 = vadd.f32 1e-12, %v75_v33 }
 0x100   :  { %v79_v36 = vmul.f32 %v1682_v34, %v76_v31  ;;  %vm85_vm2 = vweird.f32 %v1682_v34 }
 0x101   :  { %1683 = vrsqrt.f32 %v77_v35  ;;  %vm86_vm4 = vmor %vm84_vm3, %vm85_vm2  ;;  %vm94_vm6 = vweird.f32 %v77_v35  ;;  %vm725_vm2 = vcmask 523264  }
 0x102   :  { %v80_v37 = vmul.f32 %v1682_v34, %v79_v36 }
 0x104   :  { %v81_v38 = vmul.f32 0.5, %v80_v37 }
 0x106   :  { %v82_v39 = vsub.f32 1.5, %v81_v38 }
 0x107   :  { %v1684_v41 = vpop.eup %1683 }
 0x108   :  { %v83_v42 = vmul.f32 %v1682_v34, %v82_v39  ;;  %v89_v43 = vmul.f32 %v1684_v41, %v77_v35  ;;  %vm95_vm5 = vweird.f32 %v1684_v41 }
 0x109   :  { %vm96_vm7 = vmor %vm94_vm6, %vm95_vm5 }
 0x10a   :  { %v87_v45 = vsel %vm86_vm4, %v1682_v34, %v83_v42  ;;  %v90_v46 = vmul.f32 %v1684_v41, %v89_v43 }
 0x10b   :  { %v98_v47 = vmul.f32 %v87_v45, %v64_v17 }
 0x10c   :  { %v91_v49 = vmul.f32 0.5, %v90_v46 }
 0x10d   :  { %v101_v50 = vmul.f32 %v100_v44, %v98_v47 }
 0x10e   :  { %v92_v51 = vsub.f32 1.5, %v91_v49 }
 0x10f   :  { %v1913_v52 = vadd.f32 %v103_v48, %v101_v50 }
 0x110   :  { %v93_v53 = vmul.f32 %v1684_v41, %v92_v51 }
 0x111   :  { %1531 = vmatmul.msk.f32.vlgmr.msra.gmra.mxu0 %vm48_vm0, %v1913_v52 }
 0x112   :  { %v97_v54 = vsel %vm96_vm7, %v1684_v41, %v93_v53 }
 0x113   :  { %v99_v55 = vmul.f32 %v97_v54, %v65_v22 }
 0x115   :  { %v102_v56 = vmul.f32 %v100_v44, %v99_v55 }
 0x117   :  { %v1917_v57 = vadd.f32 %v103_v48, %v102_v56 }
 0x119   :  { %1532 = vmatmul.msk.f32.gmra.mxu0 %vm48_vm0, %v1917_v57 }
 0x18e   :  { %v155_v59 = vpop.f32.mrf.mxu0 }
 0x18f   :  { %v1924_v60 = vadd.f32 %v1675_v58, %v155_v59 }
 0x191   :  { %265 = vrot.lane.b32.xlu1 %v1924_v60, %s1800_s15 }
 0x196   :  { %v158_v61 = vpop.f32.mrf.mxu0 }
 0x197   :  { %v1928_v62 = vadd.f32 %v1675_v58, %v158_v61 }
 0x199   :  { %267 = vrot.lane.b32.xlu0 %v1928_v62, %s1800_s15  ;;  %165 = vrot.lane.b32.xlu2 %v1928_v62, %s1801_s16  ;;  %v2008_v48 = vpack.i.bf16 %v1924_v60, %v1928_v62 }
 0x19a   :  { %367 = vrot.lane.b32.xlu1 %v1928_v62, %s1802_s17 }
 0x1a1   :  { %465 = vrot.lane.b32.xlu0 %v1924_v60, %s1803_s18  ;;  %163 = vrot.lane.b32.xlu2 %v1924_v60, %s1801_s16 }
 0x1a2   :  { %361 = vrot.lane.b32.xlu1 %v1924_v60, %s1804_s19 }
 0x1a9   :  { %365 = vrot.lane.b32.xlu0 %v1924_v60, %s1802_s17  ;;  %261 = vrot.lane.b32.xlu2 %v1924_v60, %s1805_s20 }
 0x1b1   :  { %363 = vrot.lane.b32.xlu0 %v1928_v62, %s1804_s19  ;;  %263 = vrot.lane.b32.xlu2 %v1928_v62, %s1805_s20 }
 0x1b9   :  { %467 = vrot.lane.b32.xlu2 %v1928_v62, %s1803_s18 }
 0x1c1   :  { %461 = vrot.lane.b32.xlu2 %v1924_v60, %s1806_s21 }
 0x1c9   :  { %463 = vrot.lane.b32.xlu2 %v1928_v62, %s1806_s21 }
 0x1f3   :  { %v166_v63 = vpop.permute.xlu2 %165 }
 0x1f4   :  { %1533 = vmatpush.xpose.msk.msra.mxu1 %vm167_vm8, %v166_v63 }
 0x1fb   :  { %v164_v0 = vpop.permute.xlu2 %163 }
 0x1fc   :  { %1534 = vmatpush.xpose.msk.msra.mxu1 %vm167_vm8, %v164_v0 }
 0x1ff   :  { %1535 = vmatmul.msk.f32.vlgmr.msra.gmra.mxu1 %vm167_vm8, %v1924_v60 }
 0x203   :  { %v266_v1 = vpop.permute.xlu1 %265  ;;  %v262_v2 = vpop.permute.xlu2 %261 }
 0x207   :  { %1536 = vmatmul.msk.f32.gmra.mxu1 %vm167_vm8, %v1928_v62 }
 0x20b   :  { %v268_v3 = vpop.permute.xlu0 %267  ;;  %v264_v4 = vpop.permute.xlu2 %263 }
 0x20c   :  { %v368_v5 = vpop.permute.xlu1 %367  ;;  %1539 = vmatpush.xpose.msk.msra.mxu3 %vm167_vm8, %v268_v3 }
 0x20d   :  { %1545 = vmatpush.xpose.msk.msrb.mxu0 %vm167_vm8, %v368_v5 }
 0x210   :  { %1540 = vmatpush.xpose.msk.msra.mxu3 %vm167_vm8, %v266_v1 }
 0x213   :  { %v466_v6 = vpop.permute.xlu0 %465  ;;  %1541 = vmatmul.msk.f32.vlgmr.msra.gmra.mxu3 %vm167_vm8, %v262_v2  ;;  %v468_v7 = vpop.permute.xlu2 %467 }
 0x214   :  { %1551 = vmatpush.xpose.msk.msrb.mxu3 %vm167_vm8, %v468_v7  ;;  %v362_v9 = vpop.permute.xlu1 %361 }
 0x218   :  { %1552 = vmatpush.xpose.msk.msrb.mxu3 %vm167_vm8, %v466_v6 }
 0x21b   :  { %v366_v8 = vpop.permute.xlu0 %365  ;;  %1542 = vmatmul.msk.f32.gmra.mxu3 %vm167_vm8, %v264_v4  ;;  %v462_v10 = vpop.permute.xlu2 %461 }
 0x21c   :  { %1546 = vmatpush.xpose.msk.msrb.mxu0 %vm167_vm8, %v366_v8 }
 0x21f   :  { %1547 = vmatmul.msk.f32.vlgmr.msrb.gmra.mxu0 %vm167_vm8, %v362_v9 }
 0x223   :  { %1553 = vmatmul.msk.f32.vlgmr.msrb.gmra.mxu3 %vm167_vm8, %v462_v10  ;;  %v364_v11 = vpop.permute.xlu0 %363  ;;  %v464_v12 = vpop.permute.xlu2 %463 }
 0x227   :  { %1548 = vmatmul.msk.f32.gmra.mxu0 %vm167_vm8, %v364_v11 }
 0x22b   :  { %1554 = vmatmul.msk.f32.gmra.mxu3 %vm167_vm8, %v464_v12 }
 0x27c   :  { %v193_v13 = vpop.f32.mrf.mxu1 }
 0x27d   :  { %v199_v16 = vmul.f32 0.35355338, %v193_v13 }
 0x27f   :  { %v201_v17 = vadd.f32 %v199_v16, %v1977_v15 }
 0x281   :  { %v204_v18 = vsel %vm203_vm9, %v201_v17, -inf }
 0x282   :  { %205 = vmax.xlane.f32.xlu2 %v204_v18 }
 0x284   :  { %v196_v19 = vpop.f32.mrf.mxu1 }
 0x285   :  { %v200_v21 = vmul.f32 0.35355338, %v196_v19 }
 0x287   :  { %v202_v22 = vadd.f32 %v200_v21, %v1984_v20 }
 0x289   :  { %v207_v23 = vsel %vm203_vm9, %v202_v22, -inf }
 0x28a   :  { %208 = vmax.xlane.f32.xlu1 %v207_v23 }
 0x296   :  { %v294_v24 = vpop.f32.mrf.mxu3 }
 0x297   :  { %v300_v30 = vmul.f32 0.35355338, %v294_v24 }
 0x299   :  { %v302_v36 = vadd.f32 %v300_v30, %v1977_v15 }
 0x29b   :  { %v304_v41 = vsel %vm203_vm9, %v302_v36, -inf }
 0x29c   :  { %v394_v25 = vpop.f32.mrf.mxu0 }
 0x29d   :  { %v400_v26 = vmul.f32 0.35355338, %v394_v25 }
 0x29e   :  { %v297_v27 = vpop.f32.mrf.mxu3 }
 0x29f   :  { %v301_v28 = vmul.f32 0.35355338, %v297_v27  ;;  %v402_v29 = vadd.f32 %v400_v26, %v1977_v15 }
 0x2a1   :  { %v404_v31 = vsel %vm203_vm9, %v402_v29, -inf  ;;  %v1991_v32 = vadd.f32 %v301_v28, %v1984_v20 }
 0x2a2   :  { %405 = vmax.xlane.f32.xlu0 %v404_v31 }
 0x2a3   :  { %v307_v33 = vsel %vm203_vm9, %v1991_v32, -inf }
 0x2a4   :  { %v397_v34 = vpop.f32.mrf.mxu0  ;;  %308 = vmax.xlane.f32.xlu2 %v307_v33 }
 0x2a5   :  { %v401_v35 = vmul.f32 0.35355338, %v397_v34 }
 0x2a6   :  { %v494_v37 = vpop.f32.mrf.mxu3 }
 0x2a7   :  { %v1997_v38 = vadd.f32 %v401_v35, %v1984_v20  ;;  %v500_v39 = vmul.f32 0.35355338, %v494_v37 }
 0x2a9   :  { %v407_v40 = vsel %vm203_vm9, %v1997_v38, -inf  ;;  %v502_v42 = vadd.f32 %v500_v39, %v1977_v15 }
 0x2aa   :  { %408 = vmax.xlane.f32.xlu1 %v407_v40  ;;  %305 = vmax.xlane.f32.xlu0 %v304_v41 }
 0x2ab   :  { %v504_v45 = vsel %vm203_vm9, %v502_v42, -inf }
 0x2ae   :  { %v497_v43 = vpop.f32.mrf.mxu3 }
 0x2af   :  { %v501_v44 = vmul.f32 0.35355338, %v497_v43 }
 0x2b1   :  { %v503_v46 = vadd.f32 %v501_v44, %v1984_v20 }
 0x2b2   :  { %505 = vmax.xlane.f32.xlu1 %v504_v45 }
 0x2b3   :  { %v507_v47 = vsel %vm203_vm9, %v503_v46, -inf }
 0x2b4   :  { %508 = vmax.xlane.f32.xlu2 %v507_v47 }
 0x2cc   :  { %1636 = vrot.lane.b32.xlu2 %v2008_v48, %s1807_s2 }
 0x2f5   :  { %v206_v49 = vpop.xlane.xlu2 %205 }
 0x2f6   :  { %v210_v50 = vsub.f32 %v201_v17, %v206_v49 }
 0x2f8   :  { %v212_v51 = vmul.f32 1.442695, %v210_v50 }
 0x2fa   :  { %1685 = vpow2.f32 %v212_v51 }
 0x2fd   :  { %v209_v53 = vpop.xlane.xlu1 %208 }
 0x2fe   :  { %v211_v54 = vsub.f32 %v202_v22, %v209_v53 }
 0x300   :  { %v1686_v55 = vpop.eup %1685  ;;  %v214_v56 = vmul.f32 1.442695, %v211_v54 }
 0x301   :  { %v216_v58 = vsel %vm203_vm9, %v1686_v55, 0.0 }
 0x302   :  { %1687 = vpow2.f32 %v214_v56  ;;  %217 = vadd.xlane.f32.xlu0 %v216_v58 }
 0x308   :  { %v1688_v59 = vpop.eup %1687 }
 0x309   :  { %v219_v60 = vsel %vm203_vm9, %v1688_v59, 0.0 }
 0x30a   :  { %220 = vadd.xlane.f32.xlu1 %v219_v60 }
 0x315   :  { %v406_v61 = vpop.xlane.xlu0 %405 }
 0x316   :  { %v410_v62 = vsub.f32 %v402_v29, %v406_v61 }
 0x317   :  { %v309_v2 = vpop.xlane.xlu2 %308 }
 0x318   :  { %v412_v63 = vmul.f32 1.442695, %v410_v62  ;;  %v311_v19 = vsub.f32 %v1991_v32, %v309_v2 }
 0x31a   :  { %1689 = vpow2.f32 %v412_v63  ;;  %v314_v21 = vmul.f32 1.442695, %v311_v19 }
 0x31d   :  { %v306_v0 = vpop.xlane.xlu0 %305  ;;  %v409_v18 = vpop.xlane.xlu1 %408 }
 0x31e   :  { %v310_v1 = vsub.f32 %v302_v36, %v306_v0  ;;  %v411_v39 = vsub.f32 %v1997_v38, %v409_v18 }
 0x320   :  { %v2014_v3 = vpop.eup %1689  ;;  %v312_v4 = vmul.f32 1.442695, %v310_v1  ;;  %v414_v41 = vmul.f32 1.442695, %v411_v39 }
 0x321   :  { %v416_v5 = vsel %vm203_vm9, %v2014_v3, 0.0 }
 0x322   :  { %417 = vadd.xlane.f32.xlu2 %v416_v5  ;;  %1691 = vpow2.f32 %v312_v4 }
 0x323   :  { %1641 = vrot.lane.b32.xlu1 %v2008_v48, %s1808_s1 }
 0x325   :  { %v506_v22 = vpop.xlane.xlu1 %505 }
 0x326   :  { %v510_v23 = vsub.f32 %v502_v42, %v506_v22 }
 0x327   :  { %v509_v6 = vpop.xlane.xlu2 %508 }
 0x328   :  { %v1692_v7 = vpop.eup %1691  ;;  %v511_v12 = vsub.f32 %v503_v46, %v509_v6  ;;  %v512_v24 = vmul.f32 1.442695, %v510_v23 }
 0x329   :  { %v316_v8 = vsel %vm203_vm9, %v1692_v7, 0.0 }
 0x32a   :  { %317 = vadd.xlane.f32.xlu0 %v316_v8  ;;  %v514_v13 = vmul.f32 1.442695, %v511_v12  ;;  %v114_v12 = vld [vmem:[%s2391_s6 + $0x18] sm:$0xff] }
 0x32b   :  { %611 = vmatpush.msra.mxu0 %v114_v12 }
 0x32c   :  { %1693 = vpow2.f32 %v514_v13  ;;  %v113_v13 = vld [vmem:[%s2391_s6 + $0x10] sm:$0xff] }
 0x32d   :  { %1695 = vpow2.f32 %v314_v21  ;;  %612 = vmatpush.msra.mxu0 %v113_v13 }
 0x32e   :  { %1697 = vpow2.f32 %v512_v24 }
 0x32f   :  { %v1637_v9 = vpop.permute.xlu2 %1636 }
 0x330   :  { %v1638_v10 = vunpack.i.l.bf16 %v1637_v9  ;;  %v1639_v11 = vunpack.i.h.bf16 %v1637_v9 }
 0x332   :  { %252 = vmatpush.msra.mxu2 %v1638_v10  ;;  %v2023_v16 = vpop.eup %1693 }
 0x333   :  { %v519_v17 = vsel %vm203_vm9, %v2023_v16, 0.0  ;;  %v1696_v25 = vpop.eup %1695 }
 0x334   :  { %253 = vmatpush.msra.mxu2 %v1639_v11  ;;  %v319_v26 = vsel %vm203_vm9, %v1696_v25, 0.0  ;;  %v1698_v27 = vpop.eup %1697 }
 0x335   :  { %v516_v28 = vsel %vm203_vm9, %v1698_v27, 0.0 }
 0x33e   :  { %1646 = vrot.lane.b32.xlu0 %v2008_v48, %s1809_s25 }
 0x34d   :  { %520 = vadd.xlane.f32.xlu1 %v519_v17  ;;  %v111_v17 = vld [vmem:[%s2391_s6] sm:$0xff] }
 0x368   :  { %320 = vadd.xlane.f32.xlu0 %v319_v26 }
 0x370   :  { %517 = vadd.xlane.f32.xlu0 %v516_v28 }
 0x375   :  { %v218_v29 = vpop.xlane.xlu0 %217 }
 0x376   :  { %1699 = vrcp.f32 %v218_v29 }
 0x37c   :  { %v1700_v30 = vpop.eup %1699 }
 0x37d   :  { %v221_v31 = vpop.xlane.xlu1 %220  ;;  %v224_v33 = vmul.f32 %v1700_v30, %v1686_v55 }
 0x37e   :  { %1701 = vrcp.f32 %v221_v31  ;;  %v2073_v31 = vld [vmem:[%s2395_s10] sm:$0x3f] }
 0x37f   :  { %1537 = vmatmul.msk.f32.vlgmr.msra.gmra.mxu2 %vm203_vm9, %v224_v33  ;;  %v592_v33 = vperm.slane %v2073_v31, 0 }
 0x384   :  { %v1702_v32 = vpop.eup %1701  ;;  %1651 = vrot.lane.b32.xlu0 %v2008_v48, %s1810_s26 }
 0x385   :  { %v225_v34 = vmul.f32 %v1702_v32, %v1688_v59 }
 0x387   :  { %1538 = vmatmul.msk.f32.gmra.mxu2 %vm203_vm9, %v225_v34 }
 0x395   :  { %v1642_v35 = vpop.permute.xlu1 %1641  ;;  %v418_v56 = vpop.xlane.xlu2 %417 }
 0x396   :  { %v1643_v36 = vunpack.i.l.bf16 %v1642_v35  ;;  %v1644_v37 = vunpack.i.h.bf16 %v1642_v35 }
 0x398   :  { %352 = vmatpush.msrb.mxu2 %v1643_v36 }
 0x39a   :  { %353 = vmatpush.msrb.mxu2 %v1644_v37 }
 0x39d   :  { %v318_v40 = vpop.xlane.xlu0 %317 }
 0x39e   :  { %1703 = vrcp.f32 %v318_v40 }
 0x39f   :  { %1705 = vpow2.f32 %v414_v41 }
 0x3a4   :  { %v1704_v42 = vpop.eup %1703 }
 0x3a5   :  { %v324_v43 = vmul.f32 %v1704_v42, %v1692_v7  ;;  %v1706_v44 = vpop.eup %1705 }
 0x3a6   :  { %v419_v45 = vsel %vm203_vm9, %v1706_v44, 0.0 }
 0x3a7   :  { %1543 = vmatmul.msk.f32.vlgmr.msrb.gmra.mxu2 %vm203_vm9, %v324_v43 }
 0x3ae   :  { %420 = vadd.xlane.f32.xlu0 %v419_v45 }
 0x3b0   :  { %v1647_v46 = vpop.permute.xlu0 %1646 }
 0x3b1   :  { %v1648_v47 = vunpack.i.l.bf16 %v1647_v46  ;;  %v1649_v48 = vunpack.i.h.bf16 %v1647_v46 }
 0x3b3   :  { %552 = vmatpush.msra.mxu2 %v1648_v47 }
 0x3b5   :  { %553 = vmatpush.msra.mxu2 %v1649_v48 }
 0x3c0   :  { %v521_v53 = vpop.xlane.xlu1 %520 }
 0x3db   :  { %v321_v49 = vpop.xlane.xlu0 %320 }
 0x3dc   :  { %1707 = vrcp.f32 %v321_v49 }
 0x3e2   :  { %v1708_v38 = vpop.eup %1707 }
 0x3e3   :  { %v518_v50 = vpop.xlane.xlu0 %517  ;;  %v325_v51 = vmul.f32 %v1708_v38, %v1696_v25 }
 0x3e4   :  { %1709 = vrcp.f32 %v518_v50  ;;  %v117_v50 = vld [vmem:[%s2392_s7 + $0x10] sm:$0xff] }
 0x3e5   :  { %1544 = vmatmul.msk.f32.gmra.mxu2 %vm203_vm9, %v325_v51  ;;  %1711 = vrcp.f32 %v521_v53  ;;  %v116_v51 = vld [vmem:[%s2392_s7 + $0x8] sm:$0xff]  ;;  %v115_v53 = vld [vmem:[%s2392_s7] sm:$0xff] }
 0x3e6   :  { %1713 = vrcp.f32 %v418_v56 }
 0x3ea   :  { %v1710_v54 = vpop.eup %1709 }
 0x3eb   :  { %v524_v55 = vmul.f32 %v1710_v54, %v1698_v27  ;;  %v1712_v58 = vpop.eup %1711 }
 0x3ec   :  { %v525_v59 = vmul.f32 %v1712_v58, %v2023_v16  ;;  %v1714_v61 = vpop.eup %1713  ;;  %v112_v16 = vld [vmem:[%s2391_s6 + $0x8] sm:$0xff] }
 0x3ed   :  { %1555 = vmatmul.msk.f32.vlgmr.msra.gmra.mxu2 %vm203_vm9, %v524_v55  ;;  %v424_v0 = vmul.f32 %v1714_v61, %v2014_v3  ;;  %613 = vmatpush.msra.mxu0 %v112_v16 }
 0x3ef   :  { %614 = vmatpush.msra.mxu0 %v111_v17 }
 0x3f5   :  { %1556 = vmatmul.msk.f32.gmra.mxu2 %vm203_vm9, %v525_v59 }
 0x3f6   :  { %v1652_v60 = vpop.permute.xlu0 %1651 }
 0x3f7   :  { %v1653_v62 = vunpack.i.l.bf16 %v1652_v60  ;;  %v1654_v63 = vunpack.i.h.bf16 %v1652_v60 }
 0x3f9   :  { %452 = vmatpush.msrb.mxu1 %v1653_v62 }
 0x3fb   :  { %453 = vmatpush.msrb.mxu1 %v1654_v63 }
 0x3fc   :  { %1549 = vmatmul.msk.f32.vlgmr.msrb.gmra.mxu1 %vm203_vm9, %v424_v0  ;;  %v668_v0 = vperm.slane %v2073_v31, 2 }
 0x402   :  { %v255_v1 = vpop.f32.mrf.mxu2 }
 0x40a   :  { %v258_v4 = vpop.f32.mrf.mxu2 }
 0x421   :  { %v421_v2 = vpop.xlane.xlu0 %420 }
 0x422   :  { %1715 = vrcp.f32 %v421_v2 }
 0x428   :  { %v1716_v5 = vpop.eup %1715 }
 0x429   :  { %v425_v6 = vmul.f32 %v1716_v5, %v1706_v44 }
 0x42a   :  { %v355_v7 = vpop.f32.mrf.mxu2 }
 0x42b   :  { %1550 = vmatmul.msk.f32.gmra.mxu1 %vm203_vm9, %v425_v6  ;;  %563 = vrot.lane.b32.xlu2 %v355_v7, %s1811_s27 }
 0x468   :  { %v358_v8 = vpop.f32.mrf.mxu2 }
 0x470   :  { %v555_v9 = vpop.f32.mrf.mxu2 }
 0x471   :  { %579 = vrot.lane.b32.xlu2 %v555_v9, %s1812_s28 }
 0x478   :  { %v558_v10 = vpop.f32.mrf.mxu2 }
 0x479   :  { %v455_v3 = vpop.f32.mrf.mxu1  ;;  %565 = vrot.lane.b32.xlu2 %v358_v8, %s1811_s27 }
 0x47a   :  { %571 = vrot.lane.b32.xlu1 %v455_v3, %s2397_s29 }
 0x482   :  { %581 = vrot.lane.b32.xlu1 %v558_v10, %s1812_s28 }
 0x485   :  { %v564_v18 = vpop.permute.xlu2 %563 }
 0x486   :  { %v585_v19 = vsel %vm167_vm8, %v255_v1, %v564_v18 }
 0x4a8   :  { %v458_v11 = vpop.f32.mrf.mxu1 }
 0x4a9   :  { %573 = vrot.lane.b32.xlu0 %v458_v11, %s2397_s29 }
 0x4cb   :  { %v580_v22 = vpop.permute.xlu2 %579 }
 0x4d3   :  { %v566_v25 = vpop.permute.xlu2 %565 }
 0x4d4   :  { %v586_v26 = vsel %vm167_vm8, %v258_v4, %v566_v25  ;;  %v671_v4 = vperm.slane %v2073_v31, 3  ;;  %v124_v25 = vld [vmem:[%s2394_s9 + $0x20] sm:$0xff] }
 0x4ec   :  { %v572_v21 = vpop.permute.xlu1 %571 }
 0x4ed   :  { %v587_v23 = vsel %vm203_vm9, %v585_v19, %v572_v21 }
 0x4ee   :  { %v590_v24 = vsel %vm589_vm10, %v587_v23, %v580_v22  ;;  %v127_v22 = vld [vmem:[%s2394_s9 + $0x38] sm:$0xff]  ;;  %v126_v23 = vld [vmem:[%s2394_s9 + $0x30] sm:$0xff] }
 0x4ef   :  { %1557 = vmatmul.msk.f32.vlgmr.msra.gmra.mxu0 %vm48_vm0, %v590_v24  ;;  %740 = vmatpush.msra.mxu3 %v127_v22  ;;  %v125_v24 = vld [vmem:[%s2394_s9 + $0x28] sm:$0xff] }
 0x4f1   :  { %741 = vmatpush.msra.mxu3 %v126_v23 }
 0x4f3   :  { %742 = vmatpush.msra.mxu3 %v125_v24 }
 0x4f4   :  { %v582_v28 = vpop.permute.xlu1 %581 }
 0x4f5   :  { %743 = vmatpush.msra.mxu3 %v124_v25  ;;  %v801_v25 = vperm.slane %v2073_v31, 4 }
 0x51b   :  { %v574_v27 = vpop.permute.xlu0 %573 }
 0x51c   :  { %v588_v29 = vsel %vm203_vm9, %v586_v26, %v574_v27  ;;  %v123_v26 = vld [vmem:[%s2394_s9 + $0x18] sm:$0xff]  ;;  %v122_v27 = vld [vmem:[%s2394_s9 + $0x10] sm:$0xff] }
 0x51d   :  { %v591_v30 = vsel %vm589_vm10, %v588_v29, %v582_v28  ;;  %744 = vmatpush.msra.mxu3 %v123_v26  ;;  %v121_v28 = vld [vmem:[%s2394_s9 + $0x8] sm:$0xff]  ;;  %v120_v29 = vld [vmem:[%s2394_s9] sm:$0xff] }
 0x51e   :  { %1558 = vmatmul.msk.f32.gmra.mxu0 %vm48_vm0, %v591_v30  ;;  %v1676_v30 = vld [vmem:[%s2393_s8] ss:$0 sm:$0xff] }
 0x51f   :  { %745 = vmatpush.msra.mxu3 %v122_v27 }
 0x521   :  { %746 = vmatpush.msra.mxu3 %v121_v28  ;;  %v804_v28 = vperm.slane %v2073_v31, 5 }
 0x523   :  { %747 = vmatpush.msra.mxu3 %v120_v29 }
 0x56c   :  { %v616_v32 = vpop.f32.mrf.mxu0 }
 0x56d   :  { %v617_v34 = vadd.f32 %v616_v32, %v592_v33 }
 0x56f   :  { %v622_v35 = vadd.f32 %v617_v34, %v1913_v52 }
 0x571   :  { %v624_v36 = vsel %vm48_vm0, %v622_v35, 0.0 }
 0x572   :  { %625 = vadd.xlane.f32.xlu2 %v624_v36 }
 0x59b   :  { %v619_v37 = vpop.f32.mrf.mxu0 }
 0x59c   :  { %v620_v39 = vadd.f32 %v619_v37, %v592_v33 }
 0x59e   :  { %v623_v40 = vadd.f32 %v620_v39, %v1917_v57  ;;  %v118_v57 = vld [vmem:[%s2392_s7 + $0x18] sm:$0xff] }
 0x59f   :  { %695 = vmatpush.msra.mxu1 %v118_v57 }
 0x5a0   :  { %v627_v41 = vsel %vm48_vm0, %v623_v40, 0.0 }
 0x5a1   :  { %628 = vadd.xlane.f32.xlu1 %v627_v41  ;;  %696 = vmatpush.msra.mxu1 %v117_v50 }
 0x5a3   :  { %697 = vmatpush.msra.mxu1 %v116_v51 }
 0x5a5   :  { %698 = vmatpush.msra.mxu1 %v115_v53  ;;  %v724_v53 = vperm.slane %v2073_v31, 1 }
 0x5e5   :  { %v626_v42 = vpop.xlane.xlu2 %625 }
 0x5e6   :  { %v630_v43 = vmul.f32 %v626_v42, %v1890_v14 }
 0x5e8   :  { %v632_v44 = vsub.f32 %v622_v35, %v630_v43 }
 0x5ea   :  { %v634_v45 = vmul.f32 %v632_v44, %v632_v44 }
 0x5ec   :  { %v636_v46 = vsel %vm48_vm0, %v634_v45, 0.0 }
 0x5ed   :  { %637 = vadd.xlane.f32.xlu0 %v636_v46 }
 0x614   :  { %v629_v47 = vpop.xlane.xlu1 %628 }
 0x615   :  { %v631_v52 = vmul.f32 %v629_v47, %v1890_v14 }
 0x617   :  { %v633_v48 = vsub.f32 %v623_v40, %v631_v52 }
 0x619   :  { %v635_v49 = vmul.f32 %v633_v48, %v633_v48 }
 0x61b   :  { %v639_v38 = vsel %vm48_vm0, %v635_v49, 0.0 }
 0x61c   :  { %640 = vadd.xlane.f32.xlu2 %v639_v38 }
 0x660   :  { %v638_v54 = vpop.xlane.xlu0 %637 }
 0x661   :  { %v642_v55 = vmul.f32 %v638_v54, %v1890_v14 }
 0x663   :  { %v644_v56 = vadd.f32 1e-12, %v642_v55 }
 0x665   :  { %1717 = vrsqrt.f32 %v644_v56  ;;  %vm652_vm12 = vweird.f32 %v644_v56 }
 0x66b   :  { %v1718_v58 = vpop.eup %1717 }
 0x66c   :  { %v647_v59 = vmul.f32 %v1718_v58, %v644_v56  ;;  %vm653_vm11 = vweird.f32 %v1718_v58 }
 0x66d   :  { %vm654_vm13 = vmor %vm652_vm12, %vm653_vm11 }
 0x66e   :  { %v648_v60 = vmul.f32 %v1718_v58, %v647_v59 }
 0x670   :  { %v649_v61 = vmul.f32 0.5, %v648_v60 }
 0x672   :  { %v650_v62 = vsub.f32 1.5, %v649_v61 }
 0x674   :  { %v651_v63 = vmul.f32 %v1718_v58, %v650_v62 }
 0x676   :  { %v655_v1 = vsel %vm654_vm13, %v1718_v58, %v651_v63 }
 0x677   :  { %v666_v2 = vmul.f32 %v655_v1, %v632_v44 }
 0x679   :  { %v669_v5 = vmul.f32 %v668_v0, %v666_v2 }
 0x67b   :  { %v2099_v6 = vadd.f32 %v671_v4, %v669_v5 }
 0x67d   :  { %1559 = vmatmul.msk.f32.vlgmr.msra.gmra.mxu1 %vm48_vm0, %v2099_v6 }
 0x68f   :  { %v641_v7 = vpop.xlane.xlu2 %640 }
 0x690   :  { %v643_v8 = vmul.f32 %v641_v7, %v1890_v14 }
 0x692   :  { %v645_v9 = vadd.f32 1e-12, %v643_v8 }
 0x694   :  { %1719 = vrsqrt.f32 %v645_v9  ;;  %vm662_vm15 = vweird.f32 %v645_v9 }
 0x69a   :  { %v1720_v3 = vpop.eup %1719 }
 0x69b   :  { %v657_v10 = vmul.f32 %v1720_v3, %v645_v9  ;;  %vm663_vm14 = vweird.f32 %v1720_v3 }
 0x69c   :  { %vm664_vm1 = vmor %vm662_vm15, %vm663_vm14 }
 0x69d   :  { %v658_v11 = vmul.f32 %v1720_v3, %v657_v10  ;;  %v1565_v10 = vld [vmem:[%s2389_s4 + $0x30] sm:$0xff] }
 0x69f   :  { %v659_v12 = vmul.f32 0.5, %v658_v11  ;;  %v1564_v11 = vld [vmem:[%s2389_s4 + $0x28] sm:$0xff] }
 0x6a1   :  { %v660_v13 = vsub.f32 1.5, %v659_v12  ;;  %v1563_v12 = vld [vmem:[%s2389_s4 + $0x20] sm:$0xff] }
 0x6a3   :  { %v661_v16 = vmul.f32 %v1720_v3, %v660_v13 }
 0x6a5   :  { %v665_v17 = vsel %vm664_vm1, %v1720_v3, %v661_v16  ;;  %v1566_v3 = vld [vmem:[%s2389_s4 + $0x38] sm:$0xff] }
 0x6a6   :  { %v667_v18 = vmul.f32 %v665_v17, %v633_v48  ;;  %858 = vmatpush.msrb.mxu2 %v1566_v3 }
 0x6a8   :  { %v670_v19 = vmul.f32 %v668_v0, %v667_v18  ;;  %859 = vmatpush.msrb.mxu2 %v1565_v10 }
 0x6aa   :  { %v673_v21 = vadd.f32 %v671_v4, %v670_v19  ;;  %860 = vmatpush.msrb.mxu2 %v1564_v11 }
 0x6ac   :  { %1560 = vmatmul.msk.f32.gmra.mxu1 %vm48_vm0, %v673_v21  ;;  %861 = vmatpush.msrb.mxu2 %v1563_v12 }
 0x6fa   :  { %v700_v33 = vpop.f32.mrf.mxu1 }
 0x6fb   :  { %v701_v32 = vadd.f32 %v1676_v30, %v700_v33 }
 0x6fd   :  { %v708_v34 = vmul.f32 0.044715, %v701_v32  ;;  %v706_v41 = vmul.f32 0.5, %v701_v32 }
 0x6ff   :  { %v710_v35 = vmul.f32 %v708_v34, %v701_v32 }
 0x701   :  { %v712_v36 = vmul.f32 %v710_v35, %v701_v32 }
 0x703   :  { %v714_v37 = vadd.f32 %v712_v36, %v701_v32 }
 0x705   :  { %v716_v39 = vmul.f32 0.7978846, %v714_v37 }
 0x707   :  { %1721 = vtanh.f32 %v716_v39 }
 0x70d   :  { %v1722_v40 = vpop.eup %1721 }
 0x70e   :  { %v720_v42 = vadd.f32 1.0, %v1722_v40 }
 0x710   :  { %v722_v43 = vmul.f32 %v720_v42, %v706_v41 }
 0x712   :  { %1561 = vmatmul.msk.f32.vlgmr.msra.gmra.mxu3 %vm725_vm2, %v722_v43 }
 0x729   :  { %v703_v44 = vpop.f32.mrf.mxu1 }
 0x72a   :  { %v704_v45 = vadd.f32 %v1676_v30, %v703_v44 }
 0x72c   :  { %v709_v46 = vmul.f32 0.044715, %v704_v45  ;;  %v707_v57 = vmul.f32 0.5, %v704_v45 }
 0x72e   :  { %v711_v47 = vmul.f32 %v709_v46, %v704_v45 }
 0x730   :  { %v713_v52 = vmul.f32 %v711_v47, %v704_v45 }
 0x732   :  { %v715_v48 = vadd.f32 %v713_v52, %v704_v45  ;;  %v1677_v45 = vld [vmem:[%s2390_s5 + $0x1] ss:$0 sm:$0xff]  ;;  %s2399_s5 = smov 16  }
 0x734   :  { %v717_v49 = vmul.f32 0.7978846, %v715_v48 }
 0x736   :  { %1723 = vtanh.f32 %v717_v49 }
 0x73c   :  { %v1724_v38 = vpop.eup %1723 }
 0x73d   :  { %v721_v50 = vadd.f32 1.0, %v1724_v38 }
 0x73f   :  { %v723_v51 = vmul.f32 %v721_v50, %v707_v57 }
 0x741   :  { %1562 = vmatmul.msk.f32.gmra.mxu3 %vm725_vm2, %v723_v51 }
 0x795   :  { %v749_v54 = vpop.f32.mrf.mxu3 }
 0x796   :  { %v750_v55 = vadd.f32 %v749_v54, %v724_v53 }
 0x798   :  { %v755_v56 = vadd.f32 %v750_v55, %v2099_v6 }
 0x79a   :  { %v757_v58 = vsel %vm48_vm0, %v755_v56, 0.0 }
 0x79b   :  { %758 = vadd.xlane.f32.xlu1 %v757_v58 }
 0x7c4   :  { %v752_v59 = vpop.f32.mrf.mxu3 }
 0x7c5   :  { %v753_v60 = vadd.f32 %v752_v59, %v724_v53 }
 0x7c7   :  { %v756_v61 = vadd.f32 %v753_v60, %v673_v21 }
 0x7c9   :  { %v760_v62 = vsel %vm48_vm0, %v756_v61, 0.0 }
 0x7ca   :  { %761 = vadd.xlane.f32.xlu2 %v760_v62 }
 0x80e   :  { %v759_v63 = vpop.xlane.xlu1 %758 }
 0x80f   :  { %v763_v0 = vmul.f32 %v759_v63, %v1890_v14 }
 0x811   :  { %v765_v1 = vsub.f32 %v755_v56, %v763_v0 }
 0x813   :  { %v767_v2 = vmul.f32 %v765_v1, %v765_v1 }
 0x815   :  { %v769_v4 = vsel %vm48_vm0, %v767_v2, 0.0 }
 0x816   :  { %770 = vadd.xlane.f32.xlu1 %v769_v4 }
 0x83d   :  { %v762_v5 = vpop.xlane.xlu2 %761 }
 0x83e   :  { %v764_v6 = vmul.f32 %v762_v5, %v1890_v14 }
 0x840   :  { %v766_v7 = vsub.f32 %v756_v61, %v764_v6 }
 0x842   :  { %v768_v8 = vmul.f32 %v766_v7, %v766_v7 }
 0x844   :  { %v772_v9 = vsel %vm48_vm0, %v768_v8, 0.0 }
 0x845   :  { %773 = vadd.xlane.f32.xlu0 %v772_v9 }
 0x889   :  { %v771_v13 = vpop.xlane.xlu1 %770 }
 0x88a   :  { %v775_v16 = vmul.f32 %v771_v13, %v1890_v14 }
 0x88c   :  { %v777_v17 = vadd.f32 1e-12, %v775_v16 }
 0x88e   :  { %1725 = vrsqrt.f32 %v777_v17  ;;  %vm785_vm4 = vweird.f32 %v777_v17 }
 0x894   :  { %v1726_v18 = vpop.eup %1725 }
 0x895   :  { %v780_v19 = vmul.f32 %v1726_v18, %v777_v17  ;;  %vm786_vm3 = vweird.f32 %v1726_v18 }
 0x896   :  { %vm787_vm5 = vmor %vm785_vm4, %vm786_vm3 }
 0x897   :  { %v781_v21 = vmul.f32 %v1726_v18, %v780_v19 }
 0x899   :  { %v782_v22 = vmul.f32 0.5, %v781_v21 }
 0x89b   :  { %v783_v23 = vsub.f32 1.5, %v782_v22 }
 0x89d   :  { %v784_v24 = vmul.f32 %v1726_v18, %v783_v23 }
 0x89f   :  { %v788_v26 = vsel %vm787_vm5, %v1726_v18, %v784_v24 }
 0x8a0   :  { %v799_v27 = vmul.f32 %v788_v26, %v765_v1 }
 0x8a2   :  { %v802_v29 = vmul.f32 %v801_v25, %v799_v27 }
 0x8a4   :  { %v2157_v30 = vadd.f32 %v804_v28, %v802_v29 }
 0x8a6   :  { %1586 = vmatmul.msk.f32.vlgmr.msrb.gmra.mxu2 %vm48_vm0, %v2157_v30 }
 0x8b8   :  { %v774_v33 = vpop.xlane.xlu0 %773 }
 0x8b9   :  { %v776_v32 = vmul.f32 %v774_v33, %v1890_v14 }
 0x8bb   :  { %v778_v34 = vadd.f32 1e-12, %v776_v32 }
 0x8bd   :  { %1727 = vrsqrt.f32 %v778_v34  ;;  %vm795_vm7 = vweird.f32 %v778_v34 }
 0x8c3   :  { %v1728_v35 = vpop.eup %1727 }
 0x8c4   :  { %v790_v36 = vmul.f32 %v1728_v35, %v778_v34  ;;  %vm796_vm6 = vweird.f32 %v1728_v35 }
 0x8c5   :  { %vm797_vm11 = vmor %vm795_vm7, %vm796_vm6 }
 0x8c6   :  { %v791_v37 = vmul.f32 %v1728_v35, %v790_v36 }
 0x8c8   :  { %v792_v39 = vmul.f32 0.5, %v791_v37 }
 0x8ca   :  { %v793_v40 = vsub.f32 1.5, %v792_v39 }
 0x8cc   :  { %v794_v41 = vmul.f32 %v1728_v35, %v793_v40 }
 0x8ce   :  { %v798_v31 = vsel %vm797_vm11, %v1728_v35, %v794_v41 }
 0x8cf   :  { %v800_v42 = vmul.f32 %v798_v31, %v766_v7 }
 0x8d1   :  { %v803_v43 = vmul.f32 %v801_v25, %v800_v42 }
 0x8d3   :  { %v2162_v44 = vadd.f32 %v804_v28, %v803_v43 }
 0x8d5   :  { %1587 = vmatmul.msk.f32.gmra.mxu2 %vm48_vm0, %v2162_v44 }
 0x929   :  { %v863_v46 = vpop.f32.mrf.mxu2 }
 0x92a   :  { %v2169_v47 = vadd.f32 %v1677_v45, %v863_v46 }
 0x92c   :  { %967 = vrot.lane.b32.xlu0 %v2169_v47, %s1805_s20  ;;  %971 = vrot.lane.b32.xlu1 %v2169_v47, %s1800_s15 }
 0x934   :  { %871 = vrot.lane.b32.xlu0 %v2169_v47, %s1801_s16 }
 0x93c   :  { %1171 = vrot.lane.b32.xlu0 %v2169_v47, %s1803_s18 }
 0x944   :  { %1071 = vrot.lane.b32.xlu0 %v2169_v47, %s1802_s17 }
 0x958   :  { %v866_v52 = vpop.f32.mrf.mxu2 }
 0x959   :  { %v2181_v48 = vadd.f32 %v1677_v45, %v866_v52 }
 0x95b   :  { %973 = vrot.lane.b32.xlu2 %v2181_v48, %s1800_s15  ;;  %1069 = vrot.lane.b32.xlu0 %v2181_v48, %s1804_s19  ;;  %v1655_v35 = vpack.i.bf16 %v2169_v47, %v2181_v48 }
 0x95c   :  { %969 = vrot.lane.b32.xlu1 %v2181_v48, %s1805_s20 }
 0x963   :  { %873 = vrot.lane.b32.xlu2 %v2181_v48, %s1801_s16 }
 0x964   :  { %1167 = vrot.lane.b32.xlu1 %v2169_v47, %s1806_s21 }
 0x96b   :  { %1173 = vrot.lane.b32.xlu2 %v2181_v48, %s1803_s18 }
 0x96c   :  { %1169 = vrot.lane.b32.xlu1 %v2181_v48, %s1806_s21 }
 0x973   :  { %1073 = vrot.lane.b32.xlu2 %v2181_v48, %s1802_s17 }
 0x97b   :  { %1067 = vrot.lane.b32.xlu2 %v2169_v47, %s1804_s19 }
 0x99e   :  { %v968_v49 = vpop.permute.xlu0 %967  ;;  %v972_v57 = vpop.permute.xlu1 %971 }
 0x9a6   :  { %v872_v50 = vpop.permute.xlu0 %871 }
 0x9ae   :  { %v1172_v54 = vpop.permute.xlu0 %1171 }
 0x9b5   :  { %v974_v38 = vpop.permute.xlu2 %973 }
 0x9b6   :  { %1594 = vmatpush.xpose.msk.msrb.mxu3 %vm167_vm8, %v974_v38  ;;  %v1072_v58 = vpop.permute.xlu0 %1071 }
 0x9ba   :  { %1595 = vmatpush.xpose.msk.msrb.mxu3 %vm167_vm8, %v972_v57 }
 0x9bd   :  { %v874_v51 = vpop.permute.xlu2 %873  ;;  %1596 = vmatmul.msk.f32.vlgmr.msrb.gmra.mxu3 %vm167_vm8, %v968_v49 }
 0x9be   :  { %1588 = vmatpush.xpose.msk.msrb.mxu0 %vm167_vm8, %v874_v51 }
 0x9c2   :  { %1589 = vmatpush.xpose.msk.msrb.mxu0 %vm167_vm8, %v872_v50 }
 0x9c5   :  { %v1174_v53 = vpop.permute.xlu2 %1173  ;;  %1590 = vmatmul.msk.f32.vlgmr.msrb.gmra.mxu0 %vm167_vm8, %v2169_v47 }
 0x9c6   :  { %1606 = vmatpush.xpose.msk.msra.mxu3 %vm167_vm8, %v1174_v53 }
 0x9ca   :  { %1607 = vmatpush.xpose.msk.msra.mxu3 %vm167_vm8, %v1172_v54 }
 0x9cd   :  { %v1074_v55 = vpop.permute.xlu2 %1073  ;;  %1591 = vmatmul.msk.f32.gmra.mxu0 %vm167_vm8, %v2181_v48  ;;  %v1070_v61 = vpop.permute.xlu0 %1069 }
 0x9ce   :  { %v970_v56 = vpop.permute.xlu1 %969  ;;  %1600 = vmatpush.xpose.msk.msra.mxu0 %vm167_vm8, %v1074_v55 }
 0x9cf   :  { %1597 = vmatmul.msk.f32.gmra.mxu3 %vm167_vm8, %v970_v56 }
 0x9d2   :  { %1601 = vmatpush.xpose.msk.msra.mxu0 %vm167_vm8, %v1072_v58 }
 0x9d5   :  { %v1068_v59 = vpop.permute.xlu2 %1067 }
 0x9d6   :  { %v1168_v60 = vpop.permute.xlu1 %1167  ;;  %1602 = vmatmul.msk.f32.vlgmr.msra.gmra.mxu0 %vm167_vm8, %v1068_v59 }
 0x9d7   :  { %1608 = vmatmul.msk.f32.vlgmr.msra.gmra.mxu3 %vm167_vm8, %v1168_v60 }
 0x9de   :  { %v1170_v62 = vpop.permute.xlu1 %1169  ;;  %1603 = vmatmul.msk.f32.gmra.mxu0 %vm167_vm8, %v1070_v61 }
 0x9df   :  { %1609 = vmatmul.msk.f32.gmra.mxu3 %vm167_vm8, %v1170_v62 }
 0xa40   :  { %v1000_v63 = vpop.f32.mrf.mxu3 }
 0xa41   :  { %v1006_v0 = vmul.f32 0.35355338, %v1000_v63 }
 0xa42   :  { %v900_v1 = vpop.f32.mrf.mxu0 }
 0xa43   :  { %v906_v2 = vmul.f32 0.35355338, %v900_v1  ;;  %v1008_v4 = vadd.f32 %v1006_v0, %v1977_v15 }
 0xa45   :  { %v1010_v5 = vsel %vm203_vm9, %v1008_v4, -inf  ;;  %v908_v6 = vadd.f32 %v906_v2, %v1977_v15 }
 0xa46   :  { %1011 = vmax.xlane.f32.xlu1 %v1010_v5 }
 0xa47   :  { %v910_v7 = vsel %vm203_vm9, %v908_v6, -inf }
 0xa48   :  { %911 = vmax.xlane.f32.xlu2 %v910_v7 }
 0xa4a   :  { %v903_v8 = vpop.f32.mrf.mxu0 }
 0xa4b   :  { %v907_v9 = vmul.f32 0.35355338, %v903_v8 }
 0xa4d   :  { %v909_v3 = vadd.f32 %v907_v9, %v1984_v20 }
 0xa4f   :  { %v913_v10 = vsel %vm203_vm9, %v909_v3, -inf }
 0xa50   :  { %914 = vmax.xlane.f32.xlu1 %v913_v10 }
 0xa52   :  { %v1003_v11 = vpop.f32.mrf.mxu3 }
 0xa53   :  { %v1007_v12 = vmul.f32 0.35355338, %v1003_v11  ;;  %v1100_v13 = vpop.f32.mrf.mxu0 }
 0xa54   :  { %v1106_v17 = vmul.f32 0.35355338, %v1100_v13 }
 0xa55   :  { %v1009_v16 = vadd.f32 %v1007_v12, %v1984_v20 }
 0xa56   :  { %v1108_v22 = vadd.f32 %v1106_v17, %v1977_v15 }
 0xa57   :  { %v1013_v18 = vsel %vm203_vm9, %v1009_v16, -inf }
 0xa58   :  { %1014 = vmax.xlane.f32.xlu0 %v1013_v18  ;;  %v1110_v26 = vsel %vm203_vm9, %v1108_v22, -inf }
 0xa5a   :  { %v1200_v19 = vpop.f32.mrf.mxu3 }
 0xa5b   :  { %v1206_v21 = vmul.f32 0.35355338, %v1200_v19  ;;  %v1103_v23 = vpop.f32.mrf.mxu0 }
 0xa5c   :  { %v1107_v25 = vmul.f32 0.35355338, %v1103_v23 }
 0xa5d   :  { %v2229_v24 = vadd.f32 %v1206_v21, %v1977_v15 }
 0xa5e   :  { %v2235_v33 = vadd.f32 %v1107_v25, %v1984_v20 }
 0xa5f   :  { %v1210_v27 = vsel %vm203_vm9, %v2229_v24, -inf }
 0xa60   :  { %1111 = vmax.xlane.f32.xlu0 %v1110_v26  ;;  %1211 = vmax.xlane.f32.xlu2 %v1210_v27  ;;  %v1113_v34 = vsel %vm203_vm9, %v2235_v33, -inf }
 0xa62   :  { %v1203_v28 = vpop.f32.mrf.mxu3 }
 0xa63   :  { %v1207_v29 = vmul.f32 0.35355338, %v1203_v28 }
 0xa65   :  { %v1209_v32 = vadd.f32 %v1207_v29, %v1984_v20 }
 0xa67   :  { %v1213_v15 = vsel %vm203_vm9, %v1209_v32, -inf }
 0xa68   :  { %1114 = vmax.xlane.f32.xlu2 %v1113_v34  ;;  %1214 = vmax.xlane.f32.xlu1 %v1213_v15 }
 0xa80   :  { %1656 = vrot.lane.b32.xlu2 %v1655_v35, %s1808_s1  ;;  %s1519_s1 = sshll.u32 %s2396_s11, 4  ;;  %s1520_s1 = int_to_ptr.hbm [resolvable:$true] %s1519_s1 }
 0xab9   :  { %v1012_v36 = vpop.xlane.xlu1 %1011 }
 0xaba   :  { %v1016_v37 = vsub.f32 %v1008_v4, %v1012_v36 }
 0xabb   :  { %v912_v39 = vpop.xlane.xlu2 %911 }
 0xabc   :  { %v1018_v40 = vmul.f32 1.442695, %v1016_v37  ;;  %v916_v41 = vsub.f32 %v908_v6, %v912_v39 }
 0xabe   :  { %1729 = vpow2.f32 %v1018_v40  ;;  %v918_v31 = vmul.f32 1.442695, %v916_v41 }
 0xac0   :  { %1731 = vpow2.f32 %v918_v31 }
 0xac3   :  { %v915_v20 = vpop.xlane.xlu1 %914 }
 0xac4   :  { %v1730_v42 = vpop.eup %1729  ;;  %v917_v43 = vsub.f32 %v909_v3, %v915_v20 }
 0xac5   :  { %v1022_v45 = vsel %vm203_vm9, %v1730_v42, 0.0 }
 0xac6   :  { %v2245_v46 = vpop.eup %1731  ;;  %v920_v52 = vmul.f32 1.442695, %v917_v43  ;;  %1023 = vadd.xlane.f32.xlu0 %v1022_v45 }
 0xac7   :  { %v922_v47 = vsel %vm203_vm9, %v2245_v46, 0.0 }
 0xac8   :  { %1733 = vpow2.f32 %v920_v52  ;;  %923 = vadd.xlane.f32.xlu1 %v922_v47 }
 0xacb   :  { %v1015_v48 = vpop.xlane.xlu0 %1014 }
 0xacc   :  { %v1017_v49 = vsub.f32 %v1009_v16, %v1015_v48 }
 0xace   :  { %v2249_v38 = vpop.eup %1733  ;;  %v1020_v57 = vmul.f32 1.442695, %v1017_v49 }
 0xacf   :  { %v925_v50 = vsel %vm203_vm9, %v2249_v38, 0.0 }
 0xad0   :  { %1735 = vpow2.f32 %v1020_v57  ;;  %926 = vadd.xlane.f32.xlu0 %v925_v50 }
 0xad3   :  { %v1112_v51 = vpop.xlane.xlu0 %1111  ;;  %v1212_v53 = vpop.xlane.xlu2 %1211 }
 0xad4   :  { %v1116_v54 = vsub.f32 %v1108_v22, %v1112_v51  ;;  %v1216_v5 = vsub.f32 %v2229_v24, %v1212_v53 }
 0xad6   :  { %v1736_v55 = vpop.eup %1735  ;;  %v1118_v56 = vmul.f32 1.442695, %v1116_v54  ;;  %v1218_v7 = vmul.f32 1.442695, %v1216_v5 }
 0xad7   :  { %v1025_v58 = vsel %vm203_vm9, %v1736_v55, 0.0 }
 0xad8   :  { %1737 = vpow2.f32 %v1118_v56  ;;  %1026 = vadd.xlane.f32.xlu0 %v1025_v58  ;;  %v1571_v58 = vld [vmem:[%s2391_s6 + $0x38] sm:$0xff] }
 0xad9   :  { %1316 = vmatpush.msrb.mxu0 %v1571_v58 }
 0xadb   :  { %v1115_v59 = vpop.xlane.xlu2 %1114  ;;  %v1215_v1 = vpop.xlane.xlu1 %1214 }
 0xadc   :  { %v1217_v2 = vsub.f32 %v1209_v32, %v1215_v1  ;;  %v1117_v13 = vsub.f32 %v2235_v33, %v1115_v59  ;;  %v1570_v59 = vld [vmem:[%s2391_s6 + $0x30] sm:$0xff] }
 0xadd   :  { %1317 = vmatpush.msrb.mxu0 %v1570_v59 }
 0xade   :  { %v2254_v60 = vpop.eup %1737  ;;  %v1220_v4 = vmul.f32 1.442695, %v1217_v2  ;;  %v1120_v17 = vmul.f32 1.442695, %v1117_v13 }
 0xadf   :  { %v1122_v61 = vsel %vm203_vm9, %v2254_v60, 0.0 }
 0xae0   :  { %1123 = vadd.xlane.f32.xlu2 %v1122_v61  ;;  %1739 = vpow2.f32 %v1220_v4  ;;  %v1568_v61 = vld [vmem:[%s2391_s6 + $0x20] sm:$0xff] }
 0xae1   :  { %1661 = vrot.lane.b32.xlu1 %v1655_v35, %s1807_s2  ;;  %1741 = vpow2.f32 %v1218_v7 }
 0xae3   :  { %v1657_v62 = vpop.permute.xlu2 %1656 }
 0xae4   :  { %v1658_v63 = vunpack.i.l.bf16 %v1657_v62  ;;  %v1659_v0 = vunpack.i.h.bf16 %v1657_v62 }
 0xae6   :  { %1058 = vmatpush.msra.mxu2 %v1658_v63  ;;  %v1740_v6 = vpop.eup %1739 }
 0xae7   :  { %v1225_v8 = vsel %vm203_vm9, %v1740_v6, 0.0  ;;  %v1742_v9 = vpop.eup %1741 }
 0xae8   :  { %1059 = vmatpush.msra.mxu2 %v1659_v0  ;;  %v1222_v3 = vsel %vm203_vm9, %v1742_v9, 0.0 }
 0xaec   :  { %1666 = vrot.lane.b32.xlu0 %v1655_v35, %s1809_s25 }
 0xb0b   :  { %1226 = vadd.xlane.f32.xlu1 %v1225_v8 }
 0xb16   :  { %1223 = vadd.xlane.f32.xlu0 %v1222_v3 }
 0xb2a   :  { %1671 = vrot.lane.b32.xlu0 %v1655_v35, %s1810_s26  ;;  %s1815_s26 = smov 128  }
 0xb39   :  { %v1024_v10 = vpop.xlane.xlu0 %1023 }
 0xb3a   :  { %1743 = vrcp.f32 %v1024_v10  ;;  %v2306_v10 = vld [vmem:[%s2395_s10 + $0x8] sm:$0x3f]  ;;  %s1814_s10 = smov [#allocation2]  }
 0xb3b   :  { %1745 = vpow2.f32 %v1120_v17  ;;  %v924_v18 = vpop.xlane.xlu1 %923  ;;  %s1517_s25 = sshll.u32 %s1814_s10, 4  ;;  %s1518_s25 = int_to_ptr.vmem [resolvable:$true] %s1517_s25 }
 0xb40   :  { %v1744_v11 = vpop.eup %1743 }
 0xb41   :  { %v1030_v12 = vmul.f32 %v1744_v11, %v1730_v42  ;;  %v1746_v21 = vpop.eup %1745  ;;  %v1297_v11 = vperm.slane %v2306_v10, 0 }
 0xb42   :  { %v1125_v24 = vsel %vm203_vm9, %v1746_v21, 0.0 }
 0xb43   :  { %1598 = vmatmul.msk.f32.vlgmr.msra.gmra.mxu2 %vm203_vm9, %v1030_v12  ;;  %v927_v16 = vpop.xlane.xlu0 %926 }
 0xb4b   :  { %v1027_v19 = vpop.xlane.xlu0 %1026 }
 0xb4c   :  { %1747 = vrcp.f32 %v1027_v19 }
 0xb4d   :  { %1749 = vrcp.f32 %v924_v18 }
 0xb4e   :  { %1751 = vrcp.f32 %v927_v16 }
 0xb52   :  { %v1748_v22 = vpop.eup %1747 }
 0xb53   :  { %v1662_v23 = vpop.permute.xlu1 %1661  ;;  %v1031_v25 = vmul.f32 %v1748_v22, %v1736_v55  ;;  %v1750_v26 = vpop.eup %1749 }
 0xb54   :  { %v1663_v27 = vunpack.i.l.bf16 %v1662_v23  ;;  %1126 = vadd.xlane.f32.xlu0 %v1125_v24  ;;  %v1664_v28 = vunpack.i.h.bf16 %v1662_v23  ;;  %v930_v29 = vmul.f32 %v1750_v26, %v2245_v46  ;;  %v1752_v33 = vpop.eup %1751  ;;  %v1124_v41 = vpop.xlane.xlu2 %1123 }
 0xb55   :  { %1599 = vmatmul.msk.f32.gmra.mxu2 %vm203_vm9, %v1031_v25  ;;  %v931_v15 = vmul.f32 %v1752_v33, %v2249_v38 }
 0xb56   :  { %958 = vmatpush.msrb.mxu1 %v1663_v27 }
 0xb58   :  { %959 = vmatpush.msrb.mxu1 %v1664_v28 }
 0xb59   :  { %1592 = vmatmul.msk.f32.vlgmr.msrb.gmra.mxu1 %vm203_vm9, %v930_v29 }
 0xb5e   :  { %v1667_v32 = vpop.permute.xlu0 %1666 }
 0xb5f   :  { %v1668_v34 = vunpack.i.l.bf16 %v1667_v32  ;;  %v1669_v35 = vunpack.i.h.bf16 %v1667_v32 }
 0xb61   :  { %1593 = vmatmul.msk.f32.gmra.mxu1 %vm203_vm9, %v931_v15  ;;  %1258 = vmatpush.msrb.mxu2 %v1668_v34  ;;  %v1574_v34 = vld [vmem:[%s2392_s7 + $0x30] sm:$0xff]  ;;  %v1573_v15 = vld [vmem:[%s2392_s7 + $0x28] sm:$0xff] }
 0xb63   :  { %1259 = vmatpush.msrb.mxu2 %v1669_v35  ;;  %v1572_v35 = vld [vmem:[%s2392_s7 + $0x20] sm:$0xff] }
 0xb7e   :  { %v1227_v37 = vpop.xlane.xlu1 %1226 }
 0xb89   :  { %v1224_v36 = vpop.xlane.xlu0 %1223 }
 0xb8a   :  { %1753 = vrcp.f32 %v1224_v36 }
 0xb8b   :  { %1755 = vrcp.f32 %v1227_v37 }
 0xb8c   :  { %1757 = vrcp.f32 %v1124_v41 }
 0xb90   :  { %v1754_v39 = vpop.eup %1753 }
 0xb91   :  { %v1230_v40 = vmul.f32 %v1754_v39, %v1742_v9  ;;  %v1756_v31 = vpop.eup %1755 }
 0xb92   :  { %v1231_v20 = vmul.f32 %v1756_v31, %v1740_v6  ;;  %v1758_v43 = vpop.eup %1757 }
 0xb93   :  { %1610 = vmatmul.msk.f32.vlgmr.msrb.gmra.mxu2 %vm203_vm9, %v1230_v40  ;;  %v1130_v52 = vmul.f32 %v1758_v43, %v2254_v60  ;;  %v1569_v60 = vld [vmem:[%s2391_s6 + $0x28] sm:$0xff] }
 0xb94   :  { %1318 = vmatpush.msrb.mxu0 %v1569_v60 }
 0xb96   :  { %1319 = vmatpush.msrb.mxu0 %v1568_v61 }
 0xb9b   :  { %1611 = vmatmul.msk.f32.gmra.mxu2 %vm203_vm9, %v1231_v20 }
 0xb9c   :  { %v1672_v42 = vpop.permute.xlu0 %1671 }
 0xb9d   :  { %v1673_v45 = vunpack.i.l.bf16 %v1672_v42  ;;  %v1674_v46 = vunpack.i.h.bf16 %v1672_v42 }
 0xb9f   :  { %1158 = vmatpush.msra.mxu1 %v1673_v45  ;;  %v1373_v45 = vperm.slane %v2306_v10, 2 }
 0xba1   :  { %1159 = vmatpush.msra.mxu1 %v1674_v46 }
 0xba2   :  { %1604 = vmatmul.msk.f32.vlgmr.msra.gmra.mxu1 %vm203_vm9, %v1130_v52 }
 0xbc6   :  { %v1061_v47 = vpop.f32.mrf.mxu2 }
 0xbc7   :  { %1269 = vrot.lane.b32.xlu2 %v1061_v47, %s1811_s27  ;;  %v1127_v48 = vpop.xlane.xlu0 %1126  ;;  %v1376_v47 = vperm.slane %v2306_v10, 3 }
 0xbc8   :  { %1759 = vrcp.f32 %v1127_v48 }
 0xbce   :  { %v1760_v49 = vpop.eup %1759 }
 0xbcf   :  { %v1131_v38 = vmul.f32 %v1760_v49, %v1746_v21 }
 0xbd1   :  { %1605 = vmatmul.msk.f32.gmra.mxu1 %vm203_vm9, %v1131_v38 }
 0xbd6   :  { %v961_v57 = vpop.f32.mrf.mxu1 }
 0xbd8   :  { %v1064_v50 = vpop.f32.mrf.mxu2 }
 0xbde   :  { %v964_v53 = vpop.f32.mrf.mxu1 }
 0xc16   :  { %v1261_v51 = vpop.f32.mrf.mxu2 }
 0xc17   :  { %1285 = vrot.lane.b32.xlu2 %v1261_v51, %s1812_s28 }
 0xc1e   :  { %v1264_v55 = vpop.f32.mrf.mxu2 }
 0xc1f   :  { %1271 = vrot.lane.b32.xlu2 %v1064_v50, %s1811_s27  ;;  %v1161_v54 = vpop.f32.mrf.mxu1 }
 0xc20   :  { %1277 = vrot.lane.b32.xlu1 %v1161_v54, %s2399_s5 }
 0xc21   :  { %v1270_v62 = vpop.permute.xlu2 %1269 }
 0xc22   :  { %v1291_v63 = vsel %vm167_vm8, %v961_v57, %v1270_v62 }
 0xc28   :  { %1287 = vrot.lane.b32.xlu1 %v1264_v55, %s1812_s28 }
 0xc4e   :  { %v1164_v56 = vpop.f32.mrf.mxu1 }
 0xc4f   :  { %1279 = vrot.lane.b32.xlu0 %v1164_v56, %s2399_s5 }
 0xc71   :  { %v1286_v1 = vpop.permute.xlu2 %1285 }
 0xc79   :  { %v1272_v5 = vpop.permute.xlu2 %1271 }
 0xc7a   :  { %v1292_v6 = vsel %vm167_vm8, %v964_v53, %v1272_v5  ;;  %v1579_v5 = vld [vmem:[%s2394_s9 + $0x50] sm:$0xff] }
 0xc92   :  { %v1278_v0 = vpop.permute.xlu1 %1277 }
 0xc93   :  { %v1293_v2 = vsel %vm203_vm9, %v1291_v63, %v1278_v0  ;;  %v1584_v63 = vld [vmem:[%s2394_s9 + $0x78] sm:$0xff]  ;;  %v1583_v0 = vld [vmem:[%s2394_s9 + $0x70] sm:$0xff] }
 0xc94   :  { %v1295_v4 = vsel %vm589_vm10, %v1293_v2, %v1286_v1  ;;  %1444 = vmatpush.msrb.mxu3 %v1584_v63  ;;  %v1582_v1 = vld [vmem:[%s2394_s9 + $0x68] sm:$0xff]  ;;  %v1581_v2 = vld [vmem:[%s2394_s9 + $0x60] sm:$0xff]  ;;  %v1508_v63 = vperm.slane %v2306_v10, 5 }
 0xc95   :  { %1612 = vmatmul.msk.f32.vlgmr.msrb.gmra.mxu0 %vm48_vm0, %v1295_v4  ;;  %v1580_v4 = vld [vmem:[%s2394_s9 + $0x58] sm:$0xff] }
 0xc96   :  { %1445 = vmatpush.msrb.mxu3 %v1583_v0 }
 0xc98   :  { %1446 = vmatpush.msrb.mxu3 %v1582_v1 }
 0xc9a   :  { %v1288_v8 = vpop.permute.xlu1 %1287  ;;  %1447 = vmatpush.msrb.mxu3 %v1581_v2 }
 0xc9c   :  { %1448 = vmatpush.msrb.mxu3 %v1580_v4 }
 0xc9e   :  { %1449 = vmatpush.msrb.mxu3 %v1579_v5 }
 0xcc1   :  { %v1280_v7 = vpop.permute.xlu0 %1279 }
 0xcc2   :  { %v1294_v9 = vsel %vm203_vm9, %v1292_v6, %v1280_v7  ;;  %v1578_v6 = vld [vmem:[%s2394_s9 + $0x48] sm:$0xff]  ;;  %v1577_v7 = vld [vmem:[%s2394_s9 + $0x40] sm:$0xff] }
 0xcc3   :  { %v1296_v3 = vsel %vm589_vm10, %v1294_v9, %v1288_v8  ;;  %1450 = vmatpush.msrb.mxu3 %v1578_v6  ;;  %v1678_v8 = vld [vmem:[%s2393_s8 + $0x1] ss:$0 sm:$0xff] }
 0xcc4   :  { %1613 = vmatmul.msk.f32.gmra.mxu0 %vm48_vm0, %v1296_v3 }
 0xcc5   :  { %1451 = vmatpush.msrb.mxu3 %v1577_v7 }
 0xd12   :  { %v1321_v12 = vpop.f32.mrf.mxu0 }
 0xd13   :  { %v1322_v13 = vadd.f32 %v1321_v12, %v1297_v11 }
 0xd15   :  { %v1327_v16 = vadd.f32 %v1322_v13, %v2157_v30 }
 0xd17   :  { %v1329_v17 = vsel %vm48_vm0, %v1327_v16, 0.0 }
 0xd18   :  { %1330 = vadd.xlane.f32.xlu2 %v1329_v17 }
 0xd41   :  { %v1324_v18 = vpop.f32.mrf.mxu0 }
 0xd42   :  { %v1325_v19 = vadd.f32 %v1324_v18, %v1297_v11 }
 0xd44   :  { %v1328_v21 = vadd.f32 %v1325_v19, %v2162_v44  ;;  %v1575_v44 = vld [vmem:[%s2392_s7 + $0x38] sm:$0xff] }
 0xd45   :  { %1400 = vmatpush.msrb.mxu1 %v1575_v44 }
 0xd46   :  { %v1332_v22 = vsel %vm48_vm0, %v1328_v21, 0.0 }
 0xd47   :  { %1333 = vadd.xlane.f32.xlu1 %v1332_v22  ;;  %1401 = vmatpush.msrb.mxu1 %v1574_v34  ;;  %v1429_v34 = vperm.slane %v2306_v10, 1 }
 0xd49   :  { %1402 = vmatpush.msrb.mxu1 %v1573_v15 }
 0xd4b   :  { %1403 = vmatpush.msrb.mxu1 %v1572_v35 }
 0xd8b   :  { %v1331_v23 = vpop.xlane.xlu2 %1330 }
 0xd8c   :  { %v1335_v24 = vmul.f32 %v1331_v23, %v1890_v14 }
 0xd8e   :  { %v1337_v25 = vsub.f32 %v1327_v16, %v1335_v24 }
 0xd90   :  { %v1339_v26 = vmul.f32 %v1337_v25, %v1337_v25 }
 0xd92   :  { %v1341_v27 = vsel %vm48_vm0, %v1339_v26, 0.0 }
 0xd93   :  { %1342 = vadd.xlane.f32.xlu0 %v1341_v27 }
 0xdba   :  { %v1334_v28 = vpop.xlane.xlu1 %1333 }
 0xdbb   :  { %v1336_v30 = vmul.f32 %v1334_v28, %v1890_v14 }
 0xdbd   :  { %v1338_v29 = vsub.f32 %v1328_v21, %v1336_v30 }
 0xdbf   :  { %v1340_v33 = vmul.f32 %v1338_v29, %v1338_v29 }
 0xdc1   :  { %v1344_v32 = vsel %vm48_vm0, %v1340_v33, 0.0 }
 0xdc2   :  { %1345 = vadd.xlane.f32.xlu2 %v1344_v32 }
 0xe06   :  { %v1343_v36 = vpop.xlane.xlu0 %1342 }
 0xe07   :  { %v1347_v37 = vmul.f32 %v1343_v36, %v1890_v14 }
 0xe09   :  { %v1349_v39 = vadd.f32 1e-12, %v1347_v37 }
 0xe0b   :  { %1761 = vrsqrt.f32 %v1349_v39  ;;  %vm1357_vm9 = vweird.f32 %v1349_v39 }
 0xe11   :  { %v1762_v40 = vpop.eup %1761 }
 0xe12   :  { %v1352_v41 = vmul.f32 %v1762_v40, %v1349_v39  ;;  %vm1358_vm8 = vweird.f32 %v1762_v40 }
 0xe13   :  { %vm1359_vm10 = vmor %vm1357_vm9, %vm1358_vm8 }
 0xe14   :  { %v1353_v31 = vmul.f32 %v1762_v40, %v1352_v41 }
 0xe16   :  { %v1354_v20 = vmul.f32 0.5, %v1353_v31 }
 0xe18   :  { %v1355_v42 = vsub.f32 1.5, %v1354_v20 }
 0xe1a   :  { %v1356_v43 = vmul.f32 %v1762_v40, %v1355_v42 }
 0xe1c   :  { %v1360_v46 = vsel %vm1359_vm10, %v1762_v40, %v1356_v43 }
 0xe1d   :  { %v1371_v52 = vmul.f32 %v1360_v46, %v1337_v25 }
 0xe1f   :  { %v1374_v48 = vmul.f32 %v1373_v45, %v1371_v52 }
 0xe21   :  { %v2332_v49 = vadd.f32 %v1376_v47, %v1374_v48 }
 0xe23   :  { %1614 = vmatmul.msk.f32.vlgmr.msrb.gmra.mxu1 %vm48_vm0, %v2332_v49 }
 0xe35   :  { %v1346_v38 = vpop.xlane.xlu2 %1345 }
 0xe36   :  { %v1348_v57 = vmul.f32 %v1346_v38, %v1890_v14 }
 0xe38   :  { %v1350_v50 = vadd.f32 1e-12, %v1348_v57 }
 0xe3a   :  { %1763 = vrsqrt.f32 %v1350_v50  ;;  %vm1367_vm13 = vweird.f32 %v1350_v50 }
 0xe40   :  { %v1764_v51 = vpop.eup %1763 }
 0xe41   :  { %v1362_v53 = vmul.f32 %v1764_v51, %v1350_v50  ;;  %vm1368_vm12 = vweird.f32 %v1764_v51 }
 0xe42   :  { %vm1369_vm14 = vmor %vm1367_vm13, %vm1368_vm12 }
 0xe43   :  { %v1363_v54 = vmul.f32 %v1764_v51, %v1362_v53 }
 0xe45   :  { %v1364_v55 = vmul.f32 0.5, %v1363_v54 }
 0xe47   :  { %v1365_v56 = vsub.f32 1.5, %v1364_v55 }
 0xe49   :  { %v1366_v58 = vmul.f32 %v1764_v51, %v1365_v56 }
 0xe4b   :  { %v1370_v59 = vsel %vm1369_vm14, %v1764_v51, %v1366_v58 }
 0xe4c   :  { %v1372_v60 = vmul.f32 %v1370_v59, %v1338_v29 }
 0xe4e   :  { %v1375_v61 = vmul.f32 %v1373_v45, %v1372_v60  ;;  %v1505_v60 = vperm.slane %v2306_v10, 4 }
 0xe50   :  { %v1378_v62 = vadd.f32 %v1376_v47, %v1375_v61 }
 0xe52   :  { %1615 = vmatmul.msk.f32.gmra.mxu1 %vm48_vm0, %v1378_v62 }
 0xea0   :  { %v1405_v9 = vpop.f32.mrf.mxu1 }
 0xea1   :  { %v1406_v3 = vadd.f32 %v1678_v8, %v1405_v9 }
 0xea3   :  { %v1413_v11 = vmul.f32 0.044715, %v1406_v3  ;;  %v1411_v19 = vmul.f32 0.5, %v1406_v3 }
 0xea5   :  { %v1415_v12 = vmul.f32 %v1413_v11, %v1406_v3 }
 0xea7   :  { %v1417_v13 = vmul.f32 %v1415_v12, %v1406_v3 }
 0xea9   :  { %v1419_v16 = vadd.f32 %v1417_v13, %v1406_v3 }
 0xeab   :  { %v1421_v17 = vmul.f32 0.7978846, %v1419_v16 }
 0xead   :  { %1765 = vtanh.f32 %v1421_v17 }
 0xeb3   :  { %v1766_v18 = vpop.eup %1765 }
 0xeb4   :  { %v1425_v21 = vadd.f32 1.0, %v1766_v18 }
 0xeb6   :  { %v1427_v22 = vmul.f32 %v1425_v21, %v1411_v19 }
 0xeb8   :  { %1616 = vmatmul.msk.f32.vlgmr.msrb.gmra.mxu3 %vm725_vm2, %v1427_v22 }
 0xecf   :  { %v1408_v23 = vpop.f32.mrf.mxu1 }
 0xed0   :  { %v1409_v24 = vadd.f32 %v1678_v8, %v1408_v23 }
 0xed2   :  { %v1414_v25 = vmul.f32 0.044715, %v1409_v24  ;;  %v1412_v33 = vmul.f32 0.5, %v1409_v24 }
 0xed4   :  { %v1416_v26 = vmul.f32 %v1414_v25, %v1409_v24 }
 0xed6   :  { %v1418_v27 = vmul.f32 %v1416_v26, %v1409_v24 }
 0xed8   :  { %v1420_v28 = vadd.f32 %v1418_v27, %v1409_v24 }
 0xeda   :  { %v1422_v30 = vmul.f32 0.7978846, %v1420_v28 }
 0xedc   :  { %1767 = vtanh.f32 %v1422_v30 }
 0xee2   :  { %v1768_v29 = vpop.eup %1767 }
 0xee3   :  { %v1426_v32 = vadd.f32 1.0, %v1768_v29 }
 0xee5   :  { %v1428_v44 = vmul.f32 %v1426_v32, %v1412_v33 }
 0xee7   :  { %1617 = vmatmul.msk.f32.gmra.mxu3 %vm725_vm2, %v1428_v44 }
 0xf3b   :  { %v1453_v15 = vpop.f32.mrf.mxu3 }
 0xf3c   :  { %v1454_v35 = vadd.f32 %v1453_v15, %v1429_v34 }
 0xf3e   :  { %v1459_v36 = vadd.f32 %v1454_v35, %v2332_v49 }
 0xf40   :  { %v1461_v37 = vsel %vm48_vm0, %v1459_v36, 0.0 }
 0xf41   :  { %1462 = vadd.xlane.f32.xlu1 %v1461_v37 }
 0xf6a   :  { %v1456_v39 = vpop.f32.mrf.mxu3 }
 0xf6b   :  { %v1457_v40 = vadd.f32 %v1456_v39, %v1429_v34 }
 0xf6d   :  { %v1460_v41 = vadd.f32 %v1457_v40, %v1378_v62 }
 0xf6f   :  { %v1464_v31 = vsel %vm48_vm0, %v1460_v41, 0.0 }
 0xf70   :  { %1465 = vadd.xlane.f32.xlu2 %v1464_v31 }
 0xfb4   :  { %v1463_v20 = vpop.xlane.xlu1 %1462 }
 0xfb5   :  { %v1467_v42 = vmul.f32 %v1463_v20, %v1890_v14 }
 0xfb7   :  { %v1469_v43 = vsub.f32 %v1459_v36, %v1467_v42 }
 0xfb9   :  { %v1471_v45 = vmul.f32 %v1469_v43, %v1469_v43 }
 0xfbb   :  { %v1473_v46 = vsel %vm48_vm0, %v1471_v45, 0.0 }
 0xfbc   :  { %1474 = vadd.xlane.f32.xlu1 %v1473_v46 }
 0xfe3   :  { %v1466_v52 = vpop.xlane.xlu2 %1465 }
 0xfe4   :  { %v1468_v47 = vmul.f32 %v1466_v52, %v1890_v14 }
 0xfe6   :  { %v1470_v48 = vsub.f32 %v1460_v41, %v1468_v47 }
 0xfe8   :  { %v1472_v49 = vmul.f32 %v1470_v48, %v1470_v48 }
 0xfea   :  { %v1476_v38 = vsel %vm48_vm0, %v1472_v49, 0.0 }
 0xfeb   :  { %1477 = vadd.xlane.f32.xlu0 %v1476_v38 }
0x102f   :  { %v1475_v57 = vpop.xlane.xlu1 %1474 }
0x1030   :  { %v1479_v50 = vmul.f32 %v1475_v57, %v1890_v14 }
0x1032   :  { %v1481_v51 = vadd.f32 1e-12, %v1479_v50 }
0x1034   :  { %1769 = vrsqrt.f32 %v1481_v51  ;;  %vm1489_vm1 = vweird.f32 %v1481_v51 }
0x103a   :  { %v1770_v53 = vpop.eup %1769 }
0x103b   :  { %v1484_v54 = vmul.f32 %v1770_v53, %v1481_v51  ;;  %vm1490_vm15 = vweird.f32 %v1770_v53 }
0x103c   :  { %vm1491_vm2 = vmor %vm1489_vm1, %vm1490_vm15 }
0x103d   :  { %v1485_v55 = vmul.f32 %v1770_v53, %v1484_v54 }
0x103f   :  { %v1486_v56 = vmul.f32 0.5, %v1485_v55 }
0x1041   :  { %v1487_v58 = vsub.f32 1.5, %v1486_v56 }
0x1043   :  { %v1488_v59 = vmul.f32 %v1770_v53, %v1487_v58 }
0x1045   :  { %v1492_v61 = vsel %vm1491_vm2, %v1770_v53, %v1488_v59 }
0x1046   :  { %v1503_v62 = vmul.f32 %v1492_v61, %v1469_v43 }
0x1048   :  { %v1506_v0 = vmul.f32 %v1505_v60, %v1503_v62 }
0x104a   :  { %v1509_v1 = vadd.f32 %v1508_v63, %v1506_v0 }
0x104c   :  { %1511 = vst.msk [vmem:[#allocation2] sm:$0xff] %vm48_vm0, %v1509_v1 }
0x105e   :  { %v1478_v2 = vpop.xlane.xlu0 %1477 }
0x105f   :  { %v1480_v4 = vmul.f32 %v1478_v2, %v1890_v14 }
0x1061   :  { %v1482_v5 = vadd.f32 1e-12, %v1480_v4 }
0x1063   :  { %1771 = vrsqrt.f32 %v1482_v5  ;;  %vm1499_vm4 = vweird.f32 %v1482_v5 }
0x1069   :  { %v1772_v6 = vpop.eup %1771 }
0x106a   :  { %v1494_v7 = vmul.f32 %v1772_v6, %v1482_v5  ;;  %vm1500_vm3 = vweird.f32 %v1772_v6 }
0x106b   :  { %vm1501_vm5 = vmor %vm1499_vm4, %vm1500_vm3 }
0x106c   :  { %v1495_v8 = vmul.f32 %v1772_v6, %v1494_v7 }
0x106e   :  { %v1496_v9 = vmul.f32 0.5, %v1495_v8 }
0x1070   :  { %v1497_v3 = vsub.f32 1.5, %v1496_v9 }
0x1072   :  { %v1498_v11 = vmul.f32 %v1772_v6, %v1497_v3 }
0x1074   :  { %v1502_v12 = vsel %vm1501_vm5, %v1772_v6, %v1498_v11 }
0x1075   :  { %v1504_v10 = vmul.f32 %v1502_v12, %v1470_v48 }
0x1077   :  { %v1507_v14 = vmul.f32 %v1505_v60, %v1504_v10 }
0x1079   :  { %v1510_v13 = vadd.f32 %v1508_v63, %v1507_v14 }
0x107b   :  { %1512 = vst.msk [vmem:[#allocation2 + $0x8] sm:$0xff] %vm48_vm0, %v1510_v13 }
0x107c   :  { %1525 = dma.vmem_to_hbm [thread:$0]  %s1518_s25, 256, %s1520_s1, [#allocation3], %s1815_s26, %s1815_s26, %s1811_s27  }
0x107d   :  { %1797 = dma.done.wait [#allocation3], 256  }
0x107e   :  { %1798 = vsyncadd [#allocation3], 4294967040 }
0x107f   :  { %1530 = vsyncpa [#allocation3], 1 }

</bundles_post_ra>
